<compile_context>
chip_gen: v5e
topology: v5e:2x2
jax: 0.10.0
libtpu: 0.0.40
codegen_flags: <defaults>
</compile_context>

<pallas_src>
import functools

import numpy as np
import jax
import jax.numpy as jnp
from jax import lax
from jax.experimental import pallas as pl
from jax.experimental.pallas import tpu as pltpu

_BIG = 1e30   # sentinel distance: makes every "< threshold" selection false


# --------------------------------------------------------------------------- #
# Kernel A: distance matrix + threshold (one step, f32 Gram on the MXU).      #
# --------------------------------------------------------------------------- #
def _prologue_kernel(emb_ref, labc_ref, labr_ref, d_ref, thr_ref):
    e = emb_ref[...]                                            # (B, D) f32
    B = d_ref.shape[0]

    gram = lax.dot_general(e, e, (((1,), (1,)), ((), ())),
                           preferred_element_type=jnp.float32)  # (B, B) f32

    row_ids = lax.broadcasted_iota(jnp.int32, (B, B), 0)
    col_ids = lax.broadcasted_iota(jnp.int32, (B, B), 1)
    eye = row_ids == col_ids
    diag = jnp.where(eye, gram, 0.0)
    sq_col = jnp.sum(diag, axis=1, keepdims=True)               # (B, 1) ||e_i||^2
    sq_row = jnp.sum(diag, axis=0, keepdims=True)               # (1, B) ||e_j||^2
    dist2 = sq_row - 2.0 * gram + sq_col
    d = jnp.sqrt(jnp.maximum(dist2, 0.0) + 1e-16)
    d_ref[...] = d

    labc = labc_ref[...]                                        # (B, 1) int32
    labr = labr_ref[...]                                        # (1, B) int32
    eq = labc == labr
    posf = jnp.where(eq & (~eye), 1.0, 0.0)                     # positive-pair mask
    negf = jnp.where(eq, 0.0, 1.0)                              # negative-pair mask
    mu_pos = jnp.sum(d * posf) / jnp.sum(posf)
    mu_neg = jnp.sum(d * negf) / jnp.sum(negf)
    thr_ref[...] = jnp.reshape(jnp.maximum(mu_neg - mu_pos, 0.0), (1, 1))


# --------------------------------------------------------------------------- #
# Kernel B: per-chunk partial triplet / quadruplet sums ("parallel" k-grid).  #
# --------------------------------------------------------------------------- #
def _pair_terms_kernel(B, KT, NIB, UNROLL,
                       lab_sm,                 # (NC*KT,) int32  SMEM (prefetch)
                       d_ref,                  # (B, B)   f32    distance matrix
                       pos_ref,                # (B, B)   f32    positive-pair mask
                       dcols_ref,              # (B, KT)  f32    d columns of this chunk
                       dflat_ref,              # (NIB, IB*B) f32 d rows, lane-flattened
                       pflat_ref,              # (NIB, IB*B) f32 pos rows, lane-flattened
                       labc_ref,               # (B, 1)   int32
                       labrt_ref,              # (1, IB*B) int32 labels tiled per anchor
                       thr_ref,                # (1, 1)   f32
                       out_ref):               # (8, 128) f32    [tn, td, qn, qd, ...]
    c = pl.program_id(0)
    k0 = c * KT
    IBB = dflat_ref.shape[1]

    labc = labc_ref[...]                       # (B, 1)
    labrt = labrt_ref[...]                     # (1, IBB)
    thr = thr_ref[...]                         # (1, 1)
    half = thr * 0.5
    ohc = lax.broadcasted_iota(jnp.int32, (B, KT), 1)

    st1 = jnp.zeros((1, B), jnp.float32)       # triplet numerator row partials
    st0 = jnp.zeros((1, B), jnp.float32)       # triplet denominator row partials
    sq1 = jnp.zeros((1, IBB), jnp.float32)     # quadruplet numerator row partials
    sq0 = jnp.zeros((1, IBB), jnp.float32)     # quadruplet denominator row partials

    for kk in range(KT):                       # static unroll over the chunk
        k = k0 + kk
        lab_k = lab_sm[k]
        keep = jnp.logical_and(labc != lab_k, k < B)             # (B, 1) bool
        # Column k of d: tiny (B, KT) select+reduce on the prefetched slab.
        dk = jnp.sum(jnp.where(ohc == kk, dcols_ref[...], 0.0),
                     axis=1, keepdims=True)                       # (B, 1) = d[:, k]
        dk_m = jnp.where(keep, dk, _BIG)                          # sentinel-masked

        # ---- triplet term, O(B^2) for this k --------------------------------
        dmat = d_ref[...]
        pmat = pos_ref[...]
        vt = dk_m - dmat                                          # d[i,k] - d[i,j]
        selt = vt < thr
        st1 = st1 + jnp.sum(jnp.where(selt, pmat * jnp.maximum(vt, 0.0), 0.0),
                            axis=0, keepdims=True)
        st0 = st0 + jnp.sum(jnp.where(selt, pmat, 0.0), axis=0, keepdims=True)

        # ---- quadruplet term, O(B^3) for this k, lane-flattened anchors -----
        nkj = jnp.where(labrt != lab_k, 1.0, 0.0)                 # (1, IBB): lab_j != lab_k

        def qbody(ib, carry, nkj=nkj, dk_m=dk_m):
            s1, s0 = carry
            drow = dflat_ref[pl.ds(ib, 1), :]                     # (1, IBB): d[i, j] lanes
            wrow = pflat_ref[pl.ds(ib, 1), :] * nkj               # pos[i,j]*(lab_j != lab_k)
            v2 = dk_m - drow                                      # (B, IBB): d[k,l]-d[i,j]
            sel2 = v2 < half
            m1 = jnp.where(sel2, jnp.maximum(v2, 0.0), 0.0)
            m0 = jnp.where(sel2, 1.0, 0.0)
            r1 = jnp.sum(m1, axis=0, keepdims=True)               # contract l (sublanes)
            r0 = jnp.sum(m0, axis=0, keepdims=True)
            return s1 + r1 * wrow, s0 + r0 * wrow

        sq1, sq0 = lax.fori_loop(0, NIB, qbody, (sq1, sq0), unroll=UNROLL)

    # One lane-reduction per accumulator per chunk.
    tn = jnp.sum(st1, axis=1, keepdims=True)
    td = jnp.sum(st0, axis=1, keepdims=True)
    qn = jnp.sum(sq1, axis=1, keepdims=True)
    qd = jnp.sum(sq0, axis=1, keepdims=True)

    lane = lax.broadcasted_iota(jnp.int32, (8, 128), 1)
    out_ref[...] = (jnp.where(lane == 0, tn, 0.0) + jnp.where(lane == 1, td, 0.0)
                    + jnp.where(lane == 2, qn, 0.0) + jnp.where(lane == 3, qd, 0.0))


# --------------------------------------------------------------------------- #
# Wrapper                                                                     #
# --------------------------------------------------------------------------- #
def quadruplet_loss_pallas(embeddings, labels):
    """embeddings: (B, D) float32, labels: (B,) int -> scalar float32."""
    emb = embeddings.astype(jnp.float32)
    B, D = emb.shape
    lab = jnp.asarray(labels).astype(jnp.int32)
    labc = lab.reshape(B, 1)
    labr = lab.reshape(1, B)
    f32 = jnp.float32
    MIB = 1024 * 1024

    # ---------------- Kernel A: distances + threshold -------------------------
    vmem_a = int(min(48 * MIB, max(8 * MIB, 8 * B * D + 40 * B * B + 2 * MIB)))
    d, thr = pl.pallas_call(
        _prologue_kernel,
        out_shape=(jax.ShapeDtypeStruct((B, B), f32),
                   jax.ShapeDtypeStruct((1, 1), f32)),
        grid=(1,),
        in_specs=[pl.BlockSpec((B, D), lambda i: (0, 0)),
                  pl.BlockSpec((B, 1), lambda i: (0, 0)),
                  pl.BlockSpec((1, B), lambda i: (0, 0))],
        out_specs=(pl.BlockSpec((B, B), lambda i: (0, 0)),
                   pl.BlockSpec((1, 1), lambda i: (0, 0))),
        compiler_params=pltpu.CompilerParams(
            dimension_semantics=("arbitrary",), vmem_limit_bytes=vmem_a),
    )(emb, labc, labr)

    # ---------------- XLA-side layout prep (O(B^2), negligible) ---------------
    IB = max(1, 128 // B)                  # anchors flattened per lane block
    NIB = -(-B // IB)                      # number of anchor blocks
    Bp = NIB * IB                          # padded anchor count
    IBB = IB * B                           # lane width of the quad tiles

    eye = jnp.eye(B, dtype=bool)
    posm = jnp.where((labc == labr) & (~eye), 1.0, 0.0).astype(f32)      # (B, B)
    pad_rows = ((0, Bp - B), (0, 0))
    d_flat = jnp.pad(d, pad_rows).reshape(NIB, IBB)                      # (NIB, IBB)
    pos_flat = jnp.pad(posm, pad_rows).reshape(NIB, IBB)                 # zero-padded anchors
    labr_tiled = jnp.tile(lab, (IB,)).reshape(1, IBB)

    KT = min(8, B)                         # k values handled per grid step
    NC = -(-B // KT)                       # number of grid steps (chunks)
    lab_padded = jnp.pad(lab, (0, NC * KT - B))
    # d columns for each chunk (d is symmetric, so rows == columns).
    dcols = jnp.pad(d, ((0, NC * KT - B), (0, 0))).reshape(NC, KT, B)
    dcols = dcols.transpose(0, 2, 1)                                     # (NC, B, KT)
    UNROLL = max(1, min(4, NIB))

    kernel = functools.partial(_pair_terms_kernel, B, KT, NIB, UNROLL)

    in_bytes = 4 * (2 * B * B + 2 * Bp * B + B * KT + B + IBB + 1) + 4 * 8 * 128
    vmem_b = int(min(48 * MIB, max(8 * MIB, 2 * in_bytes + 4 * MIB)))

    grid_spec = pltpu.PrefetchScalarGridSpec(
        num_scalar_prefetch=1,             # labels -> SMEM
        grid=(NC,),
        in_specs=[
            pl.BlockSpec((B, B), lambda c, lab_ref: (0, 0)),             # d
            pl.BlockSpec((B, B), lambda c, lab_ref: (0, 0)),             # pos mask
            pl.BlockSpec((None, B, KT), lambda c, lab_ref: (c, 0, 0)),   # d columns (chunk)
            pl.BlockSpec((NIB, IBB), lambda c, lab_ref: (0, 0)),         # d rows, flattened
            pl.BlockSpec((NIB, IBB), lambda c, lab_ref: (0, 0)),         # pos rows, flattened
            pl.BlockSpec((B, 1), lambda c, lab_ref: (0, 0)),             # labels (column)
            pl.BlockSpec((1, IBB), lambda c, lab_ref: (0, 0)),           # labels (tiled row)
            pl.BlockSpec((1, 1), lambda c, lab_ref: (0, 0)),             # threshold
        ],
        out_specs=pl.BlockSpec((None, 8, 128), lambda c, lab_ref: (c, 0, 0)),
    )

    partials = pl.pallas_call(
        kernel,
        out_shape=jax.ShapeDtypeStruct((NC, 8, 128), f32),
        grid_spec=grid_spec,
        compiler_params=pltpu.CompilerParams(
            dimension_semantics=("parallel",),   # per-chunk partials: megacore-shardable
            vmem_limit_bytes=vmem_b),
    )(lab_padded, d, posm, dcols, d_flat, pos_flat, labc, labr_tiled, thr)

    sums = jnp.sum(partials[:, 0, :], axis=0)                            # (128,)
    tn, td, qn, qd = sums[0], sums[1], sums[2], sums[3]
    # Exact empty-selection semantics: 0/0 -> NaN, like torch .mean() of empty.
    return tn / td + qn / qd


# --------------------------------------------------------------------------- #
# Pure-numpy transcription of the PyTorch forward (validation only).          #
# --------------------------------------------------------------------------- #
def reference_loss_numpy(embeddings, labels):
    emb = np.asarray(embeddings, dtype=np.float32)
    lab = np.asarray(labels)
    B = lab.shape[0]
    dot = emb @ emb.T
    sqn = np.diag(dot)
    d = np.sqrt(np.maximum(sqn[None, :] - 2.0 * dot + sqn[:, None], 0.0) + 1e-16)

    eye = np.eye(B, dtype=bool)
    leq = lab[None, :] == lab[:, None]
    mask_pos = leq & ~eye
    mask_neg = (~leq) & ~eye
    tri_mask = ((~eye)[:, :, None] & (~eye)[:, None, :] & (~eye)[None, :, :]
                & leq[:, :, None] & (~leq)[:, None, :])
    quad_mask = (leq[:, :, None, None] & (~leq)[None, :, :, None]
                 & (~leq)[None, None, :, :]
                 & (~eye)[:, :, None, None] & (~eye)[None, :, :, None]
                 & (~eye)[None, None, :, :])

    mu = d[mask_neg].mean() - d[mask_pos].mean()
    thr = max(float(mu), 0.0)

    tri_vals = (d[:, None, :] - d[:, :, None])[tri_mask]
    tri_vals = tri_vals[tri_vals < thr]
    tri_loss = np.maximum(tri_vals, 0.0).mean()

    quad_vals = (d[None, None, :, :] - d[:, :, None, None])[quad_mask]
    quad_vals = quad_vals[quad_vals < thr / 2.0]
    aux_loss = np.maximum(quad_vals, 0.0).mean()
    return np.float32(tri_loss + aux_loss)


if __name__ == "__main__":
    B, D = 8, 32
    key = jax.random.PRNGKey(0)
    embeddings = jax.random.normal(key, (B, D), dtype=jnp.float32)
    labels = jnp.array([0, 0, 1, 1, 2, 2, 3, 3], dtype=jnp.int32)

    loss = jax.jit(quadruplet_loss_pallas)(embeddings, labels)
    loss = jax.block_until_ready(loss)

    ref = reference_loss_numpy(np.asarray(embeddings), np.asarray(labels))
    assert np.allclose(np.asarray(loss), ref, rtol=2e-3, atol=2e-3, equal_nan=True), \
        f"mismatch: pallas={float(loss)} ref={float(ref)}"
    print("KERNEL_OK")
</pallas_src>

<mosaic_0001>
module attributes {stable_mosaic.version = 11 : i64} {
  func.func @_prologue_kernel(%arg0: i32, %arg1: memref<8x32xf32, #tpu.memory_space<vmem>>, %arg2: memref<8x1xi32, #tpu.memory_space<vmem>>, %arg3: memref<1x8xi32, #tpu.memory_space<vmem>>, %arg4: memref<8x8xf32, #tpu.memory_space<vmem>>, %arg5: memref<1x1xf32, #tpu.memory_space<vmem>>) attributes {dimension_semantics = [#tpu.dimension_semantics<arbitrary>], iteration_bounds = array<i64: 1>, scalar_prefetch = 0 : i64, scratch_operands = 0 : i64, tpu.core_type = #tpu.core_type<tc>, window_params = [{pipeline_mode = #tpu.pipeline_mode<synchronous>, transform_indices = @transform_0, window_bounds = array<i64: 8, 32>}, {pipeline_mode = #tpu.pipeline_mode<synchronous>, transform_indices = @transform_1, window_bounds = array<i64: 8, 1>}, {pipeline_mode = #tpu.pipeline_mode<synchronous>, transform_indices = @transform_2, window_bounds = array<i64: 1, 8>}, {pipeline_mode = #tpu.pipeline_mode<synchronous>, transform_indices = @transform_3, window_bounds = array<i64: 8, 8>}, {pipeline_mode = #tpu.pipeline_mode<synchronous>, transform_indices = @transform_4, window_bounds = array<i64: 1, 1>}]} {
    %c0 = arith.constant 0 : index
    %c0_0 = arith.constant 0 : index
    %0 = vector.load %arg1[%c0, %c0_0] : memref<8x32xf32, #tpu.memory_space<vmem>>, vector<8x32xf32>
    %cst = arith.constant dense<0.000000e+00> : vector<8x8xf32>
    %1 = tpu.matmul %0, %0, %cst {dimension_numbers = #tpu.dot_dimension_numbers<[1], [1], [0], [0], [0, 0, 1, 0], [], []>} : vector<8x32xf32>, vector<8x32xf32>, vector<8x8xf32> -> vector<8x8xf32>
    %2 = tpu.iota {dimensions = array<i32: 0>} : vector<8x8xi32>
    %3 = tpu.iota {dimensions = array<i32: 1>} : vector<8x8xi32>
    %4 = arith.cmpi eq, %2, %3 : vector<8x8xi32>
    %cst_1 = arith.constant 0.000000e+00 : f32
    %5 = vector.broadcast %cst_1 : f32 to vector<8x8xf32>
    %6 = arith.select %4, %1, %5 : vector<8x8xi1>, vector<8x8xf32>
    %cst_2 = arith.constant dense<0.000000e+00> : vector<8xf32>
    %7 = vector.multi_reduction <add>, %6, %cst_2 [1] : vector<8x8xf32> to vector<8xf32>
    %8 = vector.shape_cast %7 : vector<8xf32> to vector<8x1xf32>
    %cst_3 = arith.constant dense<0.000000e+00> : vector<8xf32>
    %9 = vector.multi_reduction <add>, %6, %cst_3 [0] : vector<8x8xf32> to vector<8xf32>
    %10 = vector.shape_cast %9 : vector<8xf32> to vector<1x8xf32>
    %cst_4 = arith.constant 2.000000e+00 : f32
    %11 = vector.broadcast %cst_4 : f32 to vector<8x8xf32>
    %12 = arith.mulf %11, %1 : vector<8x8xf32>
    %13 = vector.broadcast %10 : vector<1x8xf32> to vector<8x8xf32>
    %14 = arith.subf %13, %12 : vector<8x8xf32>
    %15 = vector.broadcast %8 : vector<8x1xf32> to vector<8x8xf32>
    %16 = arith.addf %14, %15 : vector<8x8xf32>
    %cst_5 = arith.constant 0.000000e+00 : f32
    %17 = vector.broadcast %cst_5 : f32 to vector<8x8xf32>
    %18 = arith.maximumf %16, %17 : vector<8x8xf32>
    %cst_6 = arith.constant 1.000000e-16 : f32
    %19 = vector.broadcast %cst_6 : f32 to vector<8x8xf32>
    %20 = arith.addf %18, %19 : vector<8x8xf32>
    %21 = math.sqrt %20 : vector<8x8xf32>
    %c0_7 = arith.constant 0 : index
    %c0_8 = arith.constant 0 : index
    %22 = vector.load %arg4[%c0_7, %c0_8] : memref<8x8xf32, #tpu.memory_space<vmem>>, vector<8x8xf32>
    tpu.vector_store %arg4[%c0_7, %c0_8], %21 {strides = array<i32>} : memref<8x8xf32, #tpu.memory_space<vmem>>, vector<8x8xf32>,
    %c0_9 = arith.constant 0 : index
    %c0_10 = arith.constant 0 : index
    %23 = vector.load %arg2[%c0_9, %c0_10] : memref<8x1xi32, #tpu.memory_space<vmem>>, vector<8x1xi32>
    %c0_11 = arith.constant 0 : index
    %c0_12 = arith.constant 0 : index
    %24 = vector.load %arg3[%c0_11, %c0_12] : memref<1x8xi32, #tpu.memory_space<vmem>>, vector<1x8xi32>
    %25 = vector.broadcast %23 : vector<8x1xi32> to vector<8x8xi32>
    %26 = vector.broadcast %24 : vector<1x8xi32> to vector<8x8xi32>
    %27 = arith.cmpi eq, %25, %26 : vector<8x8xi32>
    %cst_13 = arith.constant dense<true> : vector<8x8xi1>
    %28 = arith.xori %4, %cst_13 : vector<8x8xi1>
    %29 = arith.andi %27, %28 : vector<8x8xi1>
    %cst_14 = arith.constant 1.000000e+00 : f32
    %cst_15 = arith.constant 0.000000e+00 : f32
    %30 = vector.broadcast %cst_14 : f32 to vector<8x8xf32>
    %31 = vector.broadcast %cst_15 : f32 to vector<8x8xf32>
    %32 = arith.select %29, %30, %31 : vector<8x8xi1>, vector<8x8xf32>
    %cst_16 = arith.constant 0.000000e+00 : f32
    %cst_17 = arith.constant 1.000000e+00 : f32
    %33 = vector.broadcast %cst_16 : f32 to vector<8x8xf32>
    %34 = vector.broadcast %cst_17 : f32 to vector<8x8xf32>
    %35 = arith.select %27, %33, %34 : vector<8x8xi1>, vector<8x8xf32>
    %36 = arith.mulf %21, %32 : vector<8x8xf32>
    %37 = vector.shape_cast %36 : vector<8x8xf32> to vector<1x8x8xf32>
    %cst_18 = arith.constant dense<0.000000e+00> : vector<1xf32>
    %38 = vector.multi_reduction <add>, %37, %cst_18 [1, 2] : vector<1x8x8xf32> to vector<1xf32>
    %39 = vector.shape_cast %38 : vector<1xf32> to vector<1x1x1xf32>
    %40 = vector.extract %39[0, 0, 0] : f32 from vector<1x1x1xf32>
    %41 = vector.shape_cast %32 : vector<8x8xf32> to vector<1x8x8xf32>
    %cst_19 = arith.constant dense<0.000000e+00> : vector<1xf32>
    %42 = vector.multi_reduction <add>, %41, %cst_19 [1, 2] : vector<1x8x8xf32> to vector<1xf32>
    %43 = vector.shape_cast %42 : vector<1xf32> to vector<1x1x1xf32>
    %44 = vector.extract %43[0, 0, 0] : f32 from vector<1x1x1xf32>
    %45 = arith.divf %40, %44 : f32
    %46 = arith.mulf %21, %35 : vector<8x8xf32>
    %47 = vector.shape_cast %46 : vector<8x8xf32> to vector<1x8x8xf32>
    %cst_20 = arith.constant dense<0.000000e+00> : vector<1xf32>
    %48 = vector.multi_reduction <add>, %47, %cst_20 [1, 2] : vector<1x8x8xf32> to vector<1xf32>
    %49 = vector.shape_cast %48 : vector<1xf32> to vector<1x1x1xf32>
    %50 = vector.extract %49[0, 0, 0] : f32 from vector<1x1x1xf32>
    %51 = vector.shape_cast %35 : vector<8x8xf32> to vector<1x8x8xf32>
    %cst_21 = arith.constant dense<0.000000e+00> : vector<1xf32>
    %52 = vector.multi_reduction <add>, %51, %cst_21 [1, 2] : vector<1x8x8xf32> to vector<1xf32>
    %53 = vector.shape_cast %52 : vector<1xf32> to vector<1x1x1xf32>
    %54 = vector.extract %53[0, 0, 0] : f32 from vector<1x1x1xf32>
    %55 = arith.divf %50, %54 : f32
    %56 = arith.subf %55, %45 : f32
    %cst_22 = arith.constant 0.000000e+00 : f32
    %57 = arith.maximumf %56, %cst_22 : f32
    %58 = vector.broadcast %57 : f32 to vector<1x1xf32>
    %c0_23 = arith.constant 0 : index
    %c0_24 = arith.constant 0 : index
    %59 = vector.load %arg5[%c0_23, %c0_24] : memref<1x1xf32, #tpu.memory_space<vmem>>, vector<1x1xf32>
    tpu.vector_store %arg5[%c0_23, %c0_24], %58 {strides = array<i32>} : memref<1x1xf32, #tpu.memory_space<vmem>>, vector<1x1xf32>,
    return
  }
  func.func @transform_0(%arg0: i32) -> (i32, i32) {
    %c0_i32 = arith.constant 0 : i32
    %c0_i32_0 = arith.constant 0 : i32
    %c0_i32_1 = arith.constant 0 : i32
    return %c0_i32, %c0_i32_0 : i32, i32
  }
  func.func @transform_1(%arg0: i32) -> (i32, i32) {
    %c0_i32 = arith.constant 0 : i32
    %c0_i32_0 = arith.constant 0 : i32
    %c0_i32_1 = arith.constant 0 : i32
    return %c0_i32, %c0_i32_0 : i32, i32
  }
  func.func @transform_2(%arg0: i32) -> (i32, i32) {
    %c0_i32 = arith.constant 0 : i32
    %c0_i32_0 = arith.constant 0 : i32
    %c0_i32_1 = arith.constant 0 : i32
    return %c0_i32, %c0_i32_0 : i32, i32
  }
  func.func @transform_3(%arg0: i32) -> (i32, i32) {
    %c0_i32 = arith.constant 0 : i32
    %c0_i32_0 = arith.constant 0 : i32
    %c0_i32_1 = arith.constant 0 : i32
    return %c0_i32, %c0_i32_0 : i32, i32
  }
  func.func @transform_4(%arg0: i32) -> (i32, i32) {
    %c0_i32 = arith.constant 0 : i32
    %c0_i32_0 = arith.constant 0 : i32
    %c0_i32_1 = arith.constant 0 : i32
    return %c0_i32, %c0_i32_0 : i32, i32
  }
}

module attributes {stable_mosaic.version = 11 : i64} {
  func.func @_pair_terms_kernel(%arg0: i32, %arg1: memref<8xi32, #tpu.memory_space<smem>>, %arg2: memref<8x8xf32, #tpu.memory_space<vmem>>, %arg3: memref<8x8xf32, #tpu.memory_space<vmem>>, %arg4: memref<1x8x8xf32, #tpu.memory_space<vmem>>, %arg5: memref<1x128xf32, #tpu.memory_space<vmem>>, %arg6: memref<1x128xf32, #tpu.memory_space<vmem>>, %arg7: memref<8x1xi32, #tpu.memory_space<vmem>>, %arg8: memref<1x128xi32, #tpu.memory_space<vmem>>, %arg9: memref<1x1xf32, #tpu.memory_space<vmem>>, %arg10: memref<1x8x128xf32, #tpu.memory_space<vmem>>) attributes {dimension_semantics = [#tpu.dimension_semantics<parallel>], iteration_bounds = array<i64: 1>, scalar_prefetch = 1 : i64, scratch_operands = 0 : i64, tpu.core_type = #tpu.core_type<tc>, window_params = [{pipeline_mode = #tpu.pipeline_mode<synchronous>, transform_indices = @transform_0, window_bounds = array<i64: 8, 8>}, {pipeline_mode = #tpu.pipeline_mode<synchronous>, transform_indices = @transform_1, window_bounds = array<i64: 8, 8>}, {transform_indices = @transform_2, window_bounds = array<i64: 1, 8, 8>}, {pipeline_mode = #tpu.pipeline_mode<synchronous>, transform_indices = @transform_3, window_bounds = array<i64: 1, 128>}, {pipeline_mode = #tpu.pipeline_mode<synchronous>, transform_indices = @transform_4, window_bounds = array<i64: 1, 128>}, {pipeline_mode = #tpu.pipeline_mode<synchronous>, transform_indices = @transform_5, window_bounds = array<i64: 8, 1>}, {pipeline_mode = #tpu.pipeline_mode<synchronous>, transform_indices = @transform_6, window_bounds = array<i64: 1, 128>}, {pipeline_mode = #tpu.pipeline_mode<synchronous>, transform_indices = @transform_7, window_bounds = array<i64: 1, 1>}, {transform_indices = @transform_8, window_bounds = array<i64: 1, 8, 128>}]} {
    %c8_i32 = arith.constant 8 : i32
    %0 = arith.muli %arg0, %c8_i32 : i32
    %c0 = arith.constant 0 : index
    %c0_0 = arith.constant 0 : index
    %1 = vector.load %arg7[%c0, %c0_0] : memref<8x1xi32, #tpu.memory_space<vmem>>, vector<8x1xi32>
    %c0_1 = arith.constant 0 : index
    %c0_2 = arith.constant 0 : index
    %2 = vector.load %arg8[%c0_1, %c0_2] : memref<1x128xi32, #tpu.memory_space<vmem>>, vector<1x128xi32>
    %c0_3 = arith.constant 0 : index
    %c0_4 = arith.constant 0 : index
    %3 = vector.load %arg9[%c0_3, %c0_4] : memref<1x1xf32, #tpu.memory_space<vmem>>, vector<1x1xf32>
    %cst = arith.constant 5.000000e-01 : f32
    %4 = vector.broadcast %cst : f32 to vector<1x1xf32>
    %5 = arith.mulf %3, %4 : vector<1x1xf32>
    %6 = tpu.iota {dimensions = array<i32: 1>} : vector<8x8xi32>
    %cst_5 = arith.constant 0.000000e+00 : f32
    %7 = vector.broadcast %cst_5 : f32 to vector<1x8xf32>
    %cst_6 = arith.constant 0.000000e+00 : f32
    %8 = vector.broadcast %cst_6 : f32 to vector<1x8xf32>
    %cst_7 = arith.constant 0.000000e+00 : f32
    %9 = vector.broadcast %cst_7 : f32 to vector<1x128xf32>
    %cst_8 = arith.constant 0.000000e+00 : f32
    %10 = vector.broadcast %cst_8 : f32 to vector<1x128xf32>
    %c0_i32 = arith.constant 0 : i32
    %11 = arith.addi %0, %c0_i32 : i32
    %12 = arith.index_cast %11 : i32 to index
    %13 = memref.load %arg1[%12] : memref<8xi32, #tpu.memory_space<smem>>
    %14 = vector.broadcast %13 : i32 to vector<8x1xi32>
    %15 = arith.cmpi ne, %1, %14 : vector<8x1xi32>
    %c8_i32_9 = arith.constant 8 : i32
    %16 = arith.cmpi slt, %11, %c8_i32_9 : i32
    %17 = vector.broadcast %16 : i1 to vector<8x1xi1>
    %18 = arith.andi %15, %17 : vector<8x1xi1>
    %c0_i32_10 = arith.constant 0 : i32
    %19 = vector.broadcast %c0_i32_10 : i32 to vector<8x8xi32>
    %20 = arith.cmpi eq, %6, %19 : vector<8x8xi32>
    %c0_11 = arith.constant 0 : index
    %c0_12 = arith.constant 0 : index
    %c0_13 = arith.constant 0 : index
    %21 = vector.load %arg4[%c0_11, %c0_12, %c0_13] : memref<1x8x8xf32, #tpu.memory_space<vmem>>, vector<1x8x8xf32>
    %22 = vector.shape_cast %21 : vector<1x8x8xf32> to vector<8x8xf32>
    %cst_14 = arith.constant 0.000000e+00 : f32
    %23 = vector.broadcast %cst_14 : f32 to vector<8x8xf32>
    %24 = arith.select %20, %22, %23 : vector<8x8xi1>, vector<8x8xf32>
    %cst_15 = arith.constant dense<0.000000e+00> : vector<8xf32>
    %25 = vector.multi_reduction <add>, %24, %cst_15 [1] : vector<8x8xf32> to vector<8xf32>
    %26 = vector.shape_cast %25 : vector<8xf32> to vector<8x1xf32>
    %cst_16 = arith.constant 1.000000e+30 : f32
    %27 = vector.broadcast %cst_16 : f32 to vector<8x1xf32>
    %28 = arith.select %18, %26, %27 : vector<8x1xi1>, vector<8x1xf32>
    %c0_17 = arith.constant 0 : index
    %c0_18 = arith.constant 0 : index
    %29 = vector.load %arg2[%c0_17, %c0_18] : memref<8x8xf32, #tpu.memory_space<vmem>>, vector<8x8xf32>
    %c0_19 = arith.constant 0 : index
    %c0_20 = arith.constant 0 : index
    %30 = vector.load %arg3[%c0_19, %c0_20] : memref<8x8xf32, #tpu.memory_space<vmem>>, vector<8x8xf32>
    %31 = vector.broadcast %28 : vector<8x1xf32> to vector<8x8xf32>
    %32 = arith.subf %31, %29 : vector<8x8xf32>
    %33 = vector.broadcast %3 : vector<1x1xf32> to vector<8x8xf32>
    %34 = arith.cmpf olt, %32, %33 : vector<8x8xf32>
    %cst_21 = arith.constant 0.000000e+00 : f32
    %35 = vector.broadcast %cst_21 : f32 to vector<8x8xf32>
    %36 = arith.maximumf %32, %35 : vector<8x8xf32>
    %37 = arith.mulf %30, %36 : vector<8x8xf32>
    %cst_22 = arith.constant 0.000000e+00 : f32
    %38 = vector.broadcast %cst_22 : f32 to vector<8x8xf32>
    %39 = arith.select %34, %37, %38 : vector<8x8xi1>, vector<8x8xf32>
    %cst_23 = arith.constant dense<0.000000e+00> : vector<8xf32>
    %40 = vector.multi_reduction <add>, %39, %cst_23 [0] : vector<8x8xf32> to vector<8xf32>
    %41 = vector.shape_cast %40 : vector<8xf32> to vector<1x8xf32>
    %42 = arith.addf %7, %41 : vector<1x8xf32>
    %cst_24 = arith.constant 0.000000e+00 : f32
    %43 = vector.broadcast %cst_24 : f32 to vector<8x8xf32>
    %44 = arith.select %34, %30, %43 : vector<8x8xi1>, vector<8x8xf32>
    %cst_25 = arith.constant dense<0.000000e+00> : vector<8xf32>
    %45 = vector.multi_reduction <add>, %44, %cst_25 [0] : vector<8x8xf32> to vector<8xf32>
    %46 = vector.shape_cast %45 : vector<8xf32> to vector<1x8xf32>
    %47 = arith.addf %8, %46 : vector<1x8xf32>
    %48 = vector.broadcast %13 : i32 to vector<1x128xi32>
    %49 = arith.cmpi ne, %2, %48 : vector<1x128xi32>
    %cst_26 = arith.constant 1.000000e+00 : f32
    %cst_27 = arith.constant 0.000000e+00 : f32
    %50 = vector.broadcast %cst_26 : f32 to vector<1x128xf32>
    %51 = vector.broadcast %cst_27 : f32 to vector<1x128xf32>
    %52 = arith.select %49, %50, %51 : vector<1x128xi1>, vector<1x128xf32>
    %c0_i32_28 = arith.constant 0 : i32
    %53 = arith.index_cast %c0_i32_28 : i32 to index
    %c0_29 = arith.constant 0 : index
    %54 = vector.load %arg5[%53, %c0_29] : memref<1x128xf32, #tpu.memory_space<vmem>>, vector<1x128xf32>
    %55 = arith.index_cast %c0_i32_28 : i32 to index
    %c0_30 = arith.constant 0 : index
    %56 = vector.load %arg6[%55, %c0_30] : memref<1x128xf32, #tpu.memory_space<vmem>>, vector<1x128xf32>
    %57 = arith.mulf %56, %52 : vector<1x128xf32>
    %58 = vector.broadcast %28 : vector<8x1xf32> to vector<8x128xf32>
    %59 = vector.broadcast %54 : vector<1x128xf32> to vector<8x128xf32>
    %60 = arith.subf %58, %59 : vector<8x128xf32>
    %61 = vector.broadcast %5 : vector<1x1xf32> to vector<8x128xf32>
    %62 = arith.cmpf olt, %60, %61 : vector<8x128xf32>
    %cst_31 = arith.constant 0.000000e+00 : f32
    %63 = vector.broadcast %cst_31 : f32 to vector<8x128xf32>
    %64 = arith.maximumf %60, %63 : vector<8x128xf32>
    %cst_32 = arith.constant 0.000000e+00 : f32
    %65 = vector.broadcast %cst_32 : f32 to vector<8x128xf32>
    %66 = arith.select %62, %64, %65 : vector<8x128xi1>, vector<8x128xf32>
    %cst_33 = arith.constant 1.000000e+00 : f32
    %cst_34 = arith.constant 0.000000e+00 : f32
    %67 = vector.broadcast %cst_33 : f32 to vector<8x128xf32>
    %68 = vector.broadcast %cst_34 : f32 to vector<8x128xf32>
    %69 = arith.select %62, %67, %68 : vector<8x128xi1>, vector<8x128xf32>
    %cst_35 = arith.constant dense<0.000000e+00> : vector<128xf32>
    %70 = vector.multi_reduction <add>, %66, %cst_35 [0] : vector<8x128xf32> to vector<128xf32>
    %71 = vector.shape_cast %70 : vector<128xf32> to vector<1x128xf32>
    %cst_36 = arith.constant dense<0.000000e+00> : vector<128xf32>
    %72 = vector.multi_reduction <add>, %69, %cst_36 [0] : vector<8x128xf32> to vector<128xf32>
    %73 = vector.shape_cast %72 : vector<128xf32> to vector<1x128xf32>
    %74 = arith.mulf %71, %57 : vector<1x128xf32>
    %75 = arith.addf %9, %74 : vector<1x128xf32>
    %76 = arith.mulf %73, %57 : vector<1x128xf32>
    %77 = arith.addf %10, %76 : vector<1x128xf32>
    %c1_i32 = arith.constant 1 : i32
    %c1_i32_37 = arith.constant 1 : i32
    %78 = arith.addi %0, %c1_i32_37 : i32
    %79 = arith.index_cast %78 : i32 to index
    %80 = memref.load %arg1[%79] : memref<8xi32, #tpu.memory_space<smem>>
    %81 = vector.broadcast %80 : i32 to vector<8x1xi32>
    %82 = arith.cmpi ne, %1, %81 : vector<8x1xi32>
    %c8_i32_38 = arith.constant 8 : i32
    %83 = arith.cmpi slt, %78, %c8_i32_38 : i32
    %84 = vector.broadcast %83 : i1 to vector<8x1xi1>
    %85 = arith.andi %82, %84 : vector<8x1xi1>
    %c1_i32_39 = arith.constant 1 : i32
    %86 = vector.broadcast %c1_i32_39 : i32 to vector<8x8xi32>
    %87 = arith.cmpi eq, %6, %86 : vector<8x8xi32>
    %c0_40 = arith.constant 0 : index
    %c0_41 = arith.constant 0 : index
    %c0_42 = arith.constant 0 : index
    %88 = vector.load %arg4[%c0_40, %c0_41, %c0_42] : memref<1x8x8xf32, #tpu.memory_space<vmem>>, vector<1x8x8xf32>
    %89 = vector.shape_cast %88 : vector<1x8x8xf32> to vector<8x8xf32>
    %cst_43 = arith.constant 0.000000e+00 : f32
    %90 = vector.broadcast %cst_43 : f32 to vector<8x8xf32>
    %91 = arith.select %87, %89, %90 : vector<8x8xi1>, vector<8x8xf32>
    %cst_44 = arith.constant dense<0.000000e+00> : vector<8xf32>
    %92 = vector.multi_reduction <add>, %91, %cst_44 [1] : vector<8x8xf32> to vector<8xf32>
    %93 = vector.shape_cast %92 : vector<8xf32> to vector<8x1xf32>
    %cst_45 = arith.constant 1.000000e+30 : f32
    %94 = vector.broadcast %cst_45 : f32 to vector<8x1xf32>
    %95 = arith.select %85, %93, %94 : vector<8x1xi1>, vector<8x1xf32>
    %c0_46 = arith.constant 0 : index
    %c0_47 = arith.constant 0 : index
    %96 = vector.load %arg2[%c0_46, %c0_47] : memref<8x8xf32, #tpu.memory_space<vmem>>, vector<8x8xf32>
    %c0_48 = arith.constant 0 : index
    %c0_49 = arith.constant 0 : index
    %97 = vector.load %arg3[%c0_48, %c0_49] : memref<8x8xf32, #tpu.memory_space<vmem>>, vector<8x8xf32>
    %98 = vector.broadcast %95 : vector<8x1xf32> to vector<8x8xf32>
    %99 = arith.subf %98, %96 : vector<8x8xf32>
    %100 = vector.broadcast %3 : vector<1x1xf32> to vector<8x8xf32>
    %101 = arith.cmpf olt, %99, %100 : vector<8x8xf32>
    %cst_50 = arith.constant 0.000000e+00 : f32
    %102 = vector.broadcast %cst_50 : f32 to vector<8x8xf32>
    %103 = arith.maximumf %99, %102 : vector<8x8xf32>
    %104 = arith.mulf %97, %103 : vector<8x8xf32>
    %cst_51 = arith.constant 0.000000e+00 : f32
    %105 = vector.broadcast %cst_51 : f32 to vector<8x8xf32>
    %106 = arith.select %101, %104, %105 : vector<8x8xi1>, vector<8x8xf32>
    %cst_52 = arith.constant dense<0.000000e+00> : vector<8xf32>
    %107 = vector.multi_reduction <add>, %106, %cst_52 [0] : vector<8x8xf32> to vector<8xf32>
    %108 = vector.shape_cast %107 : vector<8xf32> to vector<1x8xf32>
    %109 = arith.addf %42, %108 : vector<1x8xf32>
    %cst_53 = arith.constant 0.000000e+00 : f32
    %110 = vector.broadcast %cst_53 : f32 to vector<8x8xf32>
    %111 = arith.select %101, %97, %110 : vector<8x8xi1>, vector<8x8xf32>
    %cst_54 = arith.constant dense<0.000000e+00> : vector<8xf32>
    %112 = vector.multi_reduction <add>, %111, %cst_54 [0] : vector<8x8xf32> to vector<8xf32>
    %113 = vector.shape_cast %112 : vector<8xf32> to vector<1x8xf32>
    %114 = arith.addf %47, %113 : vector<1x8xf32>
    %115 = vector.broadcast %80 : i32 to vector<1x128xi32>
    %116 = arith.cmpi ne, %2, %115 : vector<1x128xi32>
    %cst_55 = arith.constant 1.000000e+00 : f32
    %cst_56 = arith.constant 0.000000e+00 : f32
    %117 = vector.broadcast %cst_55 : f32 to vector<1x128xf32>
    %118 = vector.broadcast %cst_56 : f32 to vector<1x128xf32>
    %119 = arith.select %116, %117, %118 : vector<1x128xi1>, vector<1x128xf32>
    %c0_i32_57 = arith.constant 0 : i32
    %120 = arith.index_cast %c0_i32_57 : i32 to index
    %c0_58 = arith.constant 0 : index
    %121 = vector.load %arg5[%120, %c0_58] : memref<1x128xf32, #tpu.memory_space<vmem>>, vector<1x128xf32>
    %122 = arith.index_cast %c0_i32_57 : i32 to index
    %c0_59 = arith.constant 0 : index
    %123 = vector.load %arg6[%122, %c0_59] : memref<1x128xf32, #tpu.memory_space<vmem>>, vector<1x128xf32>
    %124 = arith.mulf %123, %119 : vector<1x128xf32>
    %125 = vector.broadcast %95 : vector<8x1xf32> to vector<8x128xf32>
    %126 = vector.broadcast %121 : vector<1x128xf32> to vector<8x128xf32>
    %127 = arith.subf %125, %126 : vector<8x128xf32>
    %128 = vector.broadcast %5 : vector<1x1xf32> to vector<8x128xf32>
    %129 = arith.cmpf olt, %127, %128 : vector<8x128xf32>
    %cst_60 = arith.constant 0.000000e+00 : f32
    %130 = vector.broadcast %cst_60 : f32 to vector<8x128xf32>
    %131 = arith.maximumf %127, %130 : vector<8x128xf32>
    %cst_61 = arith.constant 0.000000e+00 : f32
    %132 = vector.broadcast %cst_61 : f32 to vector<8x128xf32>
    %133 = arith.select %129, %131, %132 : vector<8x128xi1>, vector<8x128xf32>
    %cst_62 = arith.constant 1.000000e+00 : f32
    %cst_63 = arith.constant 0.000000e+00 : f32
    %134 = vector.broadcast %cst_62 : f32 to vector<8x128xf32>
    %135 = vector.broadcast %cst_63 : f32 to vector<8x128xf32>
    %136 = arith.select %129, %134, %135 : vector<8x128xi1>, vector<8x128xf32>
    %cst_64 = arith.constant dense<0.000000e+00> : vector<128xf32>
    %137 = vector.multi_reduction <add>, %133, %cst_64 [0] : vector<8x128xf32> to vector<128xf32>
    %138 = vector.shape_cast %137 : vector<128xf32> to vector<1x128xf32>
    %cst_65 = arith.constant dense<0.000000e+00> : vector<128xf32>
    %139 = vector.multi_reduction <add>, %136, %cst_65 [0] : vector<8x128xf32> to vector<128xf32>
    %140 = vector.shape_cast %139 : vector<128xf32> to vector<1x128xf32>
    %141 = arith.mulf %138, %124 : vector<1x128xf32>
    %142 = arith.addf %75, %141 : vector<1x128xf32>
    %143 = arith.mulf %140, %124 : vector<1x128xf32>
    %144 = arith.addf %77, %143 : vector<1x128xf32>
    %c1_i32_66 = arith.constant 1 : i32
    %c2_i32 = arith.constant 2 : i32
    %145 = arith.addi %0, %c2_i32 : i32
    %146 = arith.index_cast %145 : i32 to index
    %147 = memref.load %arg1[%146] : memref<8xi32, #tpu.memory_space<smem>>
    %148 = vector.broadcast %147 : i32 to vector<8x1xi32>
    %149 = arith.cmpi ne, %1, %148 : vector<8x1xi32>
    %c8_i32_67 = arith.constant 8 : i32
    %150 = arith.cmpi slt, %145, %c8_i32_67 : i32
    %151 = vector.broadcast %150 : i1 to vector<8x1xi1>
    %152 = arith.andi %149, %151 : vector<8x1xi1>
    %c2_i32_68 = arith.constant 2 : i32
    %153 = vector.broadcast %c2_i32_68 : i32 to vector<8x8xi32>
    %154 = arith.cmpi eq, %6, %153 : vector<8x8xi32>
    %c0_69 = arith.constant 0 : index
    %c0_70 = arith.constant 0 : index
    %c0_71 = arith.constant 0 : index
    %155 = vector.load %arg4[%c0_69, %c0_70, %c0_71] : memref<1x8x8xf32, #tpu.memory_space<vmem>>, vector<1x8x8xf32>
    %156 = vector.shape_cast %155 : vector<1x8x8xf32> to vector<8x8xf32>
    %cst_72 = arith.constant 0.000000e+00 : f32
    %157 = vector.broadcast %cst_72 : f32 to vector<8x8xf32>
    %158 = arith.select %154, %156, %157 : vector<8x8xi1>, vector<8x8xf32>
    %cst_73 = arith.constant dense<0.000000e+00> : vector<8xf32>
    %159 = vector.multi_reduction <add>, %158, %cst_73 [1] : vector<8x8xf32> to vector<8xf32>
    %160 = vector.shape_cast %159 : vector<8xf32> to vector<8x1xf32>
    %cst_74 = arith.constant 1.000000e+30 : f32
    %161 = vector.broadcast %cst_74 : f32 to vector<8x1xf32>
    %162 = arith.select %152, %160, %161 : vector<8x1xi1>, vector<8x1xf32>
    %c0_75 = arith.constant 0 : index
    %c0_76 = arith.constant 0 : index
    %163 = vector.load %arg2[%c0_75, %c0_76] : memref<8x8xf32, #tpu.memory_space<vmem>>, vector<8x8xf32>
    %c0_77 = arith.constant 0 : index
    %c0_78 = arith.constant 0 : index
    %164 = vector.load %arg3[%c0_77, %c0_78] : memref<8x8xf32, #tpu.memory_space<vmem>>, vector<8x8xf32>
    %165 = vector.broadcast %162 : vector<8x1xf32> to vector<8x8xf32>
    %166 = arith.subf %165, %163 : vector<8x8xf32>
    %167 = vector.broadcast %3 : vector<1x1xf32> to vector<8x8xf32>
    %168 = arith.cmpf olt, %166, %167 : vector<8x8xf32>
    %cst_79 = arith.constant 0.000000e+00 : f32
    %169 = vector.broadcast %cst_79 : f32 to vector<8x8xf32>
    %170 = arith.maximumf %166, %169 : vector<8x8xf32>
    %171 = arith.mulf %164, %170 : vector<8x8xf32>
    %cst_80 = arith.constant 0.000000e+00 : f32
    %172 = vector.broadcast %cst_80 : f32 to vector<8x8xf32>
    %173 = arith.select %168, %171, %172 : vector<8x8xi1>, vector<8x8xf32>
    %cst_81 = arith.constant dense<0.000000e+00> : vector<8xf32>
    %174 = vector.multi_reduction <add>, %173, %cst_81 [0] : vector<8x8xf32> to vector<8xf32>
    %175 = vector.shape_cast %174 : vector<8xf32> to vector<1x8xf32>
    %176 = arith.addf %109, %175 : vector<1x8xf32>
    %cst_82 = arith.constant 0.000000e+00 : f32
    %177 = vector.broadcast %cst_82 : f32 to vector<8x8xf32>
    %178 = arith.select %168, %164, %177 : vector<8x8xi1>, vector<8x8xf32>
    %cst_83 = arith.constant dense<0.000000e+00> : vector<8xf32>
    %179 = vector.multi_reduction <add>, %178, %cst_83 [0] : vector<8x8xf32> to vector<8xf32>
    %180 = vector.shape_cast %179 : vector<8xf32> to vector<1x8xf32>
    %181 = arith.addf %114, %180 : vector<1x8xf32>
    %182 = vector.broadcast %147 : i32 to vector<1x128xi32>
    %183 = arith.cmpi ne, %2, %182 : vector<1x128xi32>
    %cst_84 = arith.constant 1.000000e+00 : f32
    %cst_85 = arith.constant 0.000000e+00 : f32
    %184 = vector.broadcast %cst_84 : f32 to vector<1x128xf32>
    %185 = vector.broadcast %cst_85 : f32 to vector<1x128xf32>
    %186 = arith.select %183, %184, %185 : vector<1x128xi1>, vector<1x128xf32>
    %c0_i32_86 = arith.constant 0 : i32
    %187 = arith.index_cast %c0_i32_86 : i32 to index
    %c0_87 = arith.constant 0 : index
    %188 = vector.load %arg5[%187, %c0_87] : memref<1x128xf32, #tpu.memory_space<vmem>>, vector<1x128xf32>
    %189 = arith.index_cast %c0_i32_86 : i32 to index
    %c0_88 = arith.constant 0 : index
    %190 = vector.load %arg6[%189, %c0_88] : memref<1x128xf32, #tpu.memory_space<vmem>>, vector<1x128xf32>
    %191 = arith.mulf %190, %186 : vector<1x128xf32>
    %192 = vector.broadcast %162 : vector<8x1xf32> to vector<8x128xf32>
    %193 = vector.broadcast %188 : vector<1x128xf32> to vector<8x128xf32>
    %194 = arith.subf %192, %193 : vector<8x128xf32>
    %195 = vector.broadcast %5 : vector<1x1xf32> to vector<8x128xf32>
    %196 = arith.cmpf olt, %194, %195 : vector<8x128xf32>
    %cst_89 = arith.constant 0.000000e+00 : f32
    %197 = vector.broadcast %cst_89 : f32 to vector<8x128xf32>
    %198 = arith.maximumf %194, %197 : vector<8x128xf32>
    %cst_90 = arith.constant 0.000000e+00 : f32
    %199 = vector.broadcast %cst_90 : f32 to vector<8x128xf32>
    %200 = arith.select %196, %198, %199 : vector<8x128xi1>, vector<8x128xf32>
    %cst_91 = arith.constant 1.000000e+00 : f32
    %cst_92 = arith.constant 0.000000e+00 : f32
    %201 = vector.broadcast %cst_91 : f32 to vector<8x128xf32>
    %202 = vector.broadcast %cst_92 : f32 to vector<8x128xf32>
    %203 = arith.select %196, %201, %202 : vector<8x128xi1>, vector<8x128xf32>
    %cst_93 = arith.constant dense<0.000000e+00> : vector<128xf32>
    %204 = vector.multi_reduction <add>, %200, %cst_93 [0] : vector<8x128xf32> to vector<128xf32>
    %205 = vector.shape_cast %204 : vector<128xf32> to vector<1x128xf32>
    %cst_94 = arith.constant dense<0.000000e+00> : vector<128xf32>
    %206 = vector.multi_reduction <add>, %203, %cst_94 [0] : vector<8x128xf32> to vector<128xf32>
    %207 = vector.shape_cast %206 : vector<128xf32> to vector<1x128xf32>
    %208 = arith.mulf %205, %191 : vector<1x128xf32>
    %209 = arith.addf %142, %208 : vector<1x128xf32>
    %210 = arith.mulf %207, %191 : vector<1x128xf32>
    %211 = arith.addf %144, %210 : vector<1x128xf32>
    %c1_i32_95 = arith.constant 1 : i32
    %c3_i32 = arith.constant 3 : i32
    %212 = arith.addi %0, %c3_i32 : i32
    %213 = arith.index_cast %212 : i32 to index
    %214 = memref.load %arg1[%213] : memref<8xi32, #tpu.memory_space<smem>>
    %215 = vector.broadcast %214 : i32 to vector<8x1xi32>
    %216 = arith.cmpi ne, %1, %215 : vector<8x1xi32>
    %c8_i32_96 = arith.constant 8 : i32
    %217 = arith.cmpi slt, %212, %c8_i32_96 : i32
    %218 = vector.broadcast %217 : i1 to vector<8x1xi1>
    %219 = arith.andi %216, %218 : vector<8x1xi1>
    %c3_i32_97 = arith.constant 3 : i32
    %220 = vector.broadcast %c3_i32_97 : i32 to vector<8x8xi32>
    %221 = arith.cmpi eq, %6, %220 : vector<8x8xi32>
    %c0_98 = arith.constant 0 : index
    %c0_99 = arith.constant 0 : index
    %c0_100 = arith.constant 0 : index
    %222 = vector.load %arg4[%c0_98, %c0_99, %c0_100] : memref<1x8x8xf32, #tpu.memory_space<vmem>>, vector<1x8x8xf32>
    %223 = vector.shape_cast %222 : vector<1x8x8xf32> to vector<8x8xf32>
    %cst_101 = arith.constant 0.000000e+00 : f32
    %224 = vector.broadcast %cst_101 : f32 to vector<8x8xf32>
    %225 = arith.select %221, %223, %224 : vector<8x8xi1>, vector<8x8xf32>
    %cst_102 = arith.constant dense<0.000000e+00> : vector<8xf32>
    %226 = vector.multi_reduction <add>, %225, %cst_102 [1] : vector<8x8xf32> to vector<8xf32>
    %227 = vector.shape_cast %226 : vector<8xf32> to vector<8x1xf32>
    %cst_103 = arith.constant 1.000000e+30 : f32
    %228 = vector.broadcast %cst_103 : f32 to vector<8x1xf32>
    %229 = arith.select %219, %227, %228 : vector<8x1xi1>, vector<8x1xf32>
    %c0_104 = arith.constant 0 : index
    %c0_105 = arith.constant 0 : index
    %230 = vector.load %arg2[%c0_104, %c0_105] : memref<8x8xf32, #tpu.memory_space<vmem>>, vector<8x8xf32>
    %c0_106 = arith.constant 0 : index
    %c0_107 = arith.constant 0 : index
    %231 = vector.load %arg3[%c0_106, %c0_107] : memref<8x8xf32, #tpu.memory_space<vmem>>, vector<8x8xf32>
    %232 = vector.broadcast %229 : vector<8x1xf32> to vector<8x8xf32>
    %233 = arith.subf %232, %230 : vector<8x8xf32>
    %234 = vector.broadcast %3 : vector<1x1xf32> to vector<8x8xf32>
    %235 = arith.cmpf olt, %233, %234 : vector<8x8xf32>
    %cst_108 = arith.constant 0.000000e+00 : f32
    %236 = vector.broadcast %cst_108 : f32 to vector<8x8xf32>
    %237 = arith.maximumf %233, %236 : vector<8x8xf32>
    %238 = arith.mulf %231, %237 : vector<8x8xf32>
    %cst_109 = arith.constant 0.000000e+00 : f32
    %239 = vector.broadcast %cst_109 : f32 to vector<8x8xf32>
    %240 = arith.select %235, %238, %239 : vector<8x8xi1>, vector<8x8xf32>
    %cst_110 = arith.constant dense<0.000000e+00> : vector<8xf32>
    %241 = vector.multi_reduction <add>, %240, %cst_110 [0] : vector<8x8xf32> to vector<8xf32>
    %242 = vector.shape_cast %241 : vector<8xf32> to vector<1x8xf32>
    %243 = arith.addf %176, %242 : vector<1x8xf32>
    %cst_111 = arith.constant 0.000000e+00 : f32
    %244 = vector.broadcast %cst_111 : f32 to vector<8x8xf32>
    %245 = arith.select %235, %231, %244 : vector<8x8xi1>, vector<8x8xf32>
    %cst_112 = arith.constant dense<0.000000e+00> : vector<8xf32>
    %246 = vector.multi_reduction <add>, %245, %cst_112 [0] : vector<8x8xf32> to vector<8xf32>
    %247 = vector.shape_cast %246 : vector<8xf32> to vector<1x8xf32>
    %248 = arith.addf %181, %247 : vector<1x8xf32>
    %249 = vector.broadcast %214 : i32 to vector<1x128xi32>
    %250 = arith.cmpi ne, %2, %249 : vector<1x128xi32>
    %cst_113 = arith.constant 1.000000e+00 : f32
    %cst_114 = arith.constant 0.000000e+00 : f32
    %251 = vector.broadcast %cst_113 : f32 to vector<1x128xf32>
    %252 = vector.broadcast %cst_114 : f32 to vector<1x128xf32>
    %253 = arith.select %250, %251, %252 : vector<1x128xi1>, vector<1x128xf32>
    %c0_i32_115 = arith.constant 0 : i32
    %254 = arith.index_cast %c0_i32_115 : i32 to index
    %c0_116 = arith.constant 0 : index
    %255 = vector.load %arg5[%254, %c0_116] : memref<1x128xf32, #tpu.memory_space<vmem>>, vector<1x128xf32>
    %256 = arith.index_cast %c0_i32_115 : i32 to index
    %c0_117 = arith.constant 0 : index
    %257 = vector.load %arg6[%256, %c0_117] : memref<1x128xf32, #tpu.memory_space<vmem>>, vector<1x128xf32>
    %258 = arith.mulf %257, %253 : vector<1x128xf32>
    %259 = vector.broadcast %229 : vector<8x1xf32> to vector<8x128xf32>
    %260 = vector.broadcast %255 : vector<1x128xf32> to vector<8x128xf32>
    %261 = arith.subf %259, %260 : vector<8x128xf32>
    %262 = vector.broadcast %5 : vector<1x1xf32> to vector<8x128xf32>
    %263 = arith.cmpf olt, %261, %262 : vector<8x128xf32>
    %cst_118 = arith.constant 0.000000e+00 : f32
    %264 = vector.broadcast %cst_118 : f32 to vector<8x128xf32>
    %265 = arith.maximumf %261, %264 : vector<8x128xf32>
    %cst_119 = arith.constant 0.000000e+00 : f32
    %266 = vector.broadcast %cst_119 : f32 to vector<8x128xf32>
    %267 = arith.select %263, %265, %266 : vector<8x128xi1>, vector<8x128xf32>
    %cst_120 = arith.constant 1.000000e+00 : f32
    %cst_121 = arith.constant 0.000000e+00 : f32
    %268 = vector.broadcast %cst_120 : f32 to vector<8x128xf32>
    %269 = vector.broadcast %cst_121 : f32 to vector<8x128xf32>
    %270 = arith.select %263, %268, %269 : vector<8x128xi1>, vector<8x128xf32>
    %cst_122 = arith.constant dense<0.000000e+00> : vector<128xf32>
    %271 = vector.multi_reduction <add>, %267, %cst_122 [0] : vector<8x128xf32> to vector<128xf32>
    %272 = vector.shape_cast %271 : vector<128xf32> to vector<1x128xf32>
    %cst_123 = arith.constant dense<0.000000e+00> : vector<128xf32>
    %273 = vector.multi_reduction <add>, %270, %cst_123 [0] : vector<8x128xf32> to vector<128xf32>
    %274 = vector.shape_cast %273 : vector<128xf32> to vector<1x128xf32>
    %275 = arith.mulf %272, %258 : vector<1x128xf32>
    %276 = arith.addf %209, %275 : vector<1x128xf32>
    %277 = arith.mulf %274, %258 : vector<1x128xf32>
    %278 = arith.addf %211, %277 : vector<1x128xf32>
    %c1_i32_124 = arith.constant 1 : i32
    %c4_i32 = arith.constant 4 : i32
    %279 = arith.addi %0, %c4_i32 : i32
    %280 = arith.index_cast %279 : i32 to index
    %281 = memref.load %arg1[%280] : memref<8xi32, #tpu.memory_space<smem>>
    %282 = vector.broadcast %281 : i32 to vector<8x1xi32>
    %283 = arith.cmpi ne, %1, %282 : vector<8x1xi32>
    %c8_i32_125 = arith.constant 8 : i32
    %284 = arith.cmpi slt, %279, %c8_i32_125 : i32
    %285 = vector.broadcast %284 : i1 to vector<8x1xi1>
    %286 = arith.andi %283, %285 : vector<8x1xi1>
    %c4_i32_126 = arith.constant 4 : i32
    %287 = vector.broadcast %c4_i32_126 : i32 to vector<8x8xi32>
    %288 = arith.cmpi eq, %6, %287 : vector<8x8xi32>
    %c0_127 = arith.constant 0 : index
    %c0_128 = arith.constant 0 : index
    %c0_129 = arith.constant 0 : index
    %289 = vector.load %arg4[%c0_127, %c0_128, %c0_129] : memref<1x8x8xf32, #tpu.memory_space<vmem>>, vector<1x8x8xf32>
    %290 = vector.shape_cast %289 : vector<1x8x8xf32> to vector<8x8xf32>
    %cst_130 = arith.constant 0.000000e+00 : f32
    %291 = vector.broadcast %cst_130 : f32 to vector<8x8xf32>
    %292 = arith.select %288, %290, %291 : vector<8x8xi1>, vector<8x8xf32>
    %cst_131 = arith.constant dense<0.000000e+00> : vector<8xf32>
    %293 = vector.multi_reduction <add>, %292, %cst_131 [1] : vector<8x8xf32> to vector<8xf32>
    %294 = vector.shape_cast %293 : vector<8xf32> to vector<8x1xf32>
    %cst_132 = arith.constant 1.000000e+30 : f32
    %295 = vector.broadcast %cst_132 : f32 to vector<8x1xf32>
    %296 = arith.select %286, %294, %295 : vector<8x1xi1>, vector<8x1xf32>
    %c0_133 = arith.constant 0 : index
    %c0_134 = arith.constant 0 : index
    %297 = vector.load %arg2[%c0_133, %c0_134] : memref<8x8xf32, #tpu.memory_space<vmem>>, vector<8x8xf32>
    %c0_135 = arith.constant 0 : index
    %c0_136 = arith.constant 0 : index
    %298 = vector.load %arg3[%c0_135, %c0_136] : memref<8x8xf32, #tpu.memory_space<vmem>>, vector<8x8xf32>
    %299 = vector.broadcast %296 : vector<8x1xf32> to vector<8x8xf32>
    %300 = arith.subf %299, %297 : vector<8x8xf32>
    %301 = vector.broadcast %3 : vector<1x1xf32> to vector<8x8xf32>
    %302 = arith.cmpf olt, %300, %301 : vector<8x8xf32>
    %cst_137 = arith.constant 0.000000e+00 : f32
    %303 = vector.broadcast %cst_137 : f32 to vector<8x8xf32>
    %304 = arith.maximumf %300, %303 : vector<8x8xf32>
    %305 = arith.mulf %298, %304 : vector<8x8xf32>
    %cst_138 = arith.constant 0.000000e+00 : f32
    %306 = vector.broadcast %cst_138 : f32 to vector<8x8xf32>
    %307 = arith.select %302, %305, %306 : vector<8x8xi1>, vector<8x8xf32>
    %cst_139 = arith.constant dense<0.000000e+00> : vector<8xf32>
    %308 = vector.multi_reduction <add>, %307, %cst_139 [0] : vector<8x8xf32> to vector<8xf32>
    %309 = vector.shape_cast %308 : vector<8xf32> to vector<1x8xf32>
    %310 = arith.addf %243, %309 : vector<1x8xf32>
    %cst_140 = arith.constant 0.000000e+00 : f32
    %311 = vector.broadcast %cst_140 : f32 to vector<8x8xf32>
    %312 = arith.select %302, %298, %311 : vector<8x8xi1>, vector<8x8xf32>
    %cst_141 = arith.constant dense<0.000000e+00> : vector<8xf32>
    %313 = vector.multi_reduction <add>, %312, %cst_141 [0] : vector<8x8xf32> to vector<8xf32>
    %314 = vector.shape_cast %313 : vector<8xf32> to vector<1x8xf32>
    %315 = arith.addf %248, %314 : vector<1x8xf32>
    %316 = vector.broadcast %281 : i32 to vector<1x128xi32>
    %317 = arith.cmpi ne, %2, %316 : vector<1x128xi32>
    %cst_142 = arith.constant 1.000000e+00 : f32
    %cst_143 = arith.constant 0.000000e+00 : f32
    %318 = vector.broadcast %cst_142 : f32 to vector<1x128xf32>
    %319 = vector.broadcast %cst_143 : f32 to vector<1x128xf32>
    %320 = arith.select %317, %318, %319 : vector<1x128xi1>, vector<1x128xf32>
    %c0_i32_144 = arith.constant 0 : i32
    %321 = arith.index_cast %c0_i32_144 : i32 to index
    %c0_145 = arith.constant 0 : index
    %322 = vector.load %arg5[%321, %c0_145] : memref<1x128xf32, #tpu.memory_space<vmem>>, vector<1x128xf32>
    %323 = arith.index_cast %c0_i32_144 : i32 to index
    %c0_146 = arith.constant 0 : index
    %324 = vector.load %arg6[%323, %c0_146] : memref<1x128xf32, #tpu.memory_space<vmem>>, vector<1x128xf32>
    %325 = arith.mulf %324, %320 : vector<1x128xf32>
    %326 = vector.broadcast %296 : vector<8x1xf32> to vector<8x128xf32>
    %327 = vector.broadcast %322 : vector<1x128xf32> to vector<8x128xf32>
    %328 = arith.subf %326, %327 : vector<8x128xf32>
    %329 = vector.broadcast %5 : vector<1x1xf32> to vector<8x128xf32>
    %330 = arith.cmpf olt, %328, %329 : vector<8x128xf32>
    %cst_147 = arith.constant 0.000000e+00 : f32
    %331 = vector.broadcast %cst_147 : f32 to vector<8x128xf32>
    %332 = arith.maximumf %328, %331 : vector<8x128xf32>
    %cst_148 = arith.constant 0.000000e+00 : f32
    %333 = vector.broadcast %cst_148 : f32 to vector<8x128xf32>
    %334 = arith.select %330, %332, %333 : vector<8x128xi1>, vector<8x128xf32>
    %cst_149 = arith.constant 1.000000e+00 : f32
    %cst_150 = arith.constant 0.000000e+00 : f32
    %335 = vector.broadcast %cst_149 : f32 to vector<8x128xf32>
    %336 = vector.broadcast %cst_150 : f32 to vector<8x128xf32>
    %337 = arith.select %330, %335, %336 : vector<8x128xi1>, vector<8x128xf32>
    %cst_151 = arith.constant dense<0.000000e+00> : vector<128xf32>
    %338 = vector.multi_reduction <add>, %334, %cst_151 [0] : vector<8x128xf32> to vector<128xf32>
    %339 = vector.shape_cast %338 : vector<128xf32> to vector<1x128xf32>
    %cst_152 = arith.constant dense<0.000000e+00> : vector<128xf32>
    %340 = vector.multi_reduction <add>, %337, %cst_152 [0] : vector<8x128xf32> to vector<128xf32>
    %341 = vector.shape_cast %340 : vector<128xf32> to vector<1x128xf32>
    %342 = arith.mulf %339, %325 : vector<1x128xf32>
    %343 = arith.addf %276, %342 : vector<1x128xf32>
    %344 = arith.mulf %341, %325 : vector<1x128xf32>
    %345 = arith.addf %278, %344 : vector<1x128xf32>
    %c1_i32_153 = arith.constant 1 : i32
    %c5_i32 = arith.constant 5 : i32
    %346 = arith.addi %0, %c5_i32 : i32
    %347 = arith.index_cast %346 : i32 to index
    %348 = memref.load %arg1[%347] : memref<8xi32, #tpu.memory_space<smem>>
    %349 = vector.broadcast %348 : i32 to vector<8x1xi32>
    %350 = arith.cmpi ne, %1, %349 : vector<8x1xi32>
    %c8_i32_154 = arith.constant 8 : i32
    %351 = arith.cmpi slt, %346, %c8_i32_154 : i32
    %352 = vector.broadcast %351 : i1 to vector<8x1xi1>
    %353 = arith.andi %350, %352 : vector<8x1xi1>
    %c5_i32_155 = arith.constant 5 : i32
    %354 = vector.broadcast %c5_i32_155 : i32 to vector<8x8xi32>
    %355 = arith.cmpi eq, %6, %354 : vector<8x8xi32>
    %c0_156 = arith.constant 0 : index
    %c0_157 = arith.constant 0 : index
    %c0_158 = arith.constant 0 : index
    %356 = vector.load %arg4[%c0_156, %c0_157, %c0_158] : memref<1x8x8xf32, #tpu.memory_space<vmem>>, vector<1x8x8xf32>
    %357 = vector.shape_cast %356 : vector<1x8x8xf32> to vector<8x8xf32>
    %cst_159 = arith.constant 0.000000e+00 : f32
    %358 = vector.broadcast %cst_159 : f32 to vector<8x8xf32>
    %359 = arith.select %355, %357, %358 : vector<8x8xi1>, vector<8x8xf32>
    %cst_160 = arith.constant dense<0.000000e+00> : vector<8xf32>
    %360 = vector.multi_reduction <add>, %359, %cst_160 [1] : vector<8x8xf32> to vector<8xf32>
    %361 = vector.shape_cast %360 : vector<8xf32> to vector<8x1xf32>
    %cst_161 = arith.constant 1.000000e+30 : f32
    %362 = vector.broadcast %cst_161 : f32 to vector<8x1xf32>
    %363 = arith.select %353, %361, %362 : vector<8x1xi1>, vector<8x1xf32>
    %c0_162 = arith.constant 0 : index
    %c0_163 = arith.constant 0 : index
    %364 = vector.load %arg2[%c0_162, %c0_163] : memref<8x8xf32, #tpu.memory_space<vmem>>, vector<8x8xf32>
    %c0_164 = arith.constant 0 : index
    %c0_165 = arith.constant 0 : index
    %365 = vector.load %arg3[%c0_164, %c0_165] : memref<8x8xf32, #tpu.memory_space<vmem>>, vector<8x8xf32>
    %366 = vector.broadcast %363 : vector<8x1xf32> to vector<8x8xf32>
    %367 = arith.subf %366, %364 : vector<8x8xf32>
    %368 = vector.broadcast %3 : vector<1x1xf32> to vector<8x8xf32>
    %369 = arith.cmpf olt, %367, %368 : vector<8x8xf32>
    %cst_166 = arith.constant 0.000000e+00 : f32
    %370 = vector.broadcast %cst_166 : f32 to vector<8x8xf32>
    %371 = arith.maximumf %367, %370 : vector<8x8xf32>
    %372 = arith.mulf %365, %371 : vector<8x8xf32>
    %cst_167 = arith.constant 0.000000e+00 : f32
    %373 = vector.broadcast %cst_167 : f32 to vector<8x8xf32>
    %374 = arith.select %369, %372, %373 : vector<8x8xi1>, vector<8x8xf32>
    %cst_168 = arith.constant dense<0.000000e+00> : vector<8xf32>
    %375 = vector.multi_reduction <add>, %374, %cst_168 [0] : vector<8x8xf32> to vector<8xf32>
    %376 = vector.shape_cast %375 : vector<8xf32> to vector<1x8xf32>
    %377 = arith.addf %310, %376 : vector<1x8xf32>
    %cst_169 = arith.constant 0.000000e+00 : f32
    %378 = vector.broadcast %cst_169 : f32 to vector<8x8xf32>
    %379 = arith.select %369, %365, %378 : vector<8x8xi1>, vector<8x8xf32>
    %cst_170 = arith.constant dense<0.000000e+00> : vector<8xf32>
    %380 = vector.multi_reduction <add>, %379, %cst_170 [0] : vector<8x8xf32> to vector<8xf32>
    %381 = vector.shape_cast %380 : vector<8xf32> to vector<1x8xf32>
    %382 = arith.addf %315, %381 : vector<1x8xf32>
    %383 = vector.broadcast %348 : i32 to vector<1x128xi32>
    %384 = arith.cmpi ne, %2, %383 : vector<1x128xi32>
    %cst_171 = arith.constant 1.000000e+00 : f32
    %cst_172 = arith.constant 0.000000e+00 : f32
    %385 = vector.broadcast %cst_171 : f32 to vector<1x128xf32>
    %386 = vector.broadcast %cst_172 : f32 to vector<1x128xf32>
    %387 = arith.select %384, %385, %386 : vector<1x128xi1>, vector<1x128xf32>
    %c0_i32_173 = arith.constant 0 : i32
    %388 = arith.index_cast %c0_i32_173 : i32 to index
    %c0_174 = arith.constant 0 : index
    %389 = vector.load %arg5[%388, %c0_174] : memref<1x128xf32, #tpu.memory_space<vmem>>, vector<1x128xf32>
    %390 = arith.index_cast %c0_i32_173 : i32 to index
    %c0_175 = arith.constant 0 : index
    %391 = vector.load %arg6[%390, %c0_175] : memref<1x128xf32, #tpu.memory_space<vmem>>, vector<1x128xf32>
    %392 = arith.mulf %391, %387 : vector<1x128xf32>
    %393 = vector.broadcast %363 : vector<8x1xf32> to vector<8x128xf32>
    %394 = vector.broadcast %389 : vector<1x128xf32> to vector<8x128xf32>
    %395 = arith.subf %393, %394 : vector<8x128xf32>
    %396 = vector.broadcast %5 : vector<1x1xf32> to vector<8x128xf32>
    %397 = arith.cmpf olt, %395, %396 : vector<8x128xf32>
    %cst_176 = arith.constant 0.000000e+00 : f32
    %398 = vector.broadcast %cst_176 : f32 to vector<8x128xf32>
    %399 = arith.maximumf %395, %398 : vector<8x128xf32>
    %cst_177 = arith.constant 0.000000e+00 : f32
    %400 = vector.broadcast %cst_177 : f32 to vector<8x128xf32>
    %401 = arith.select %397, %399, %400 : vector<8x128xi1>, vector<8x128xf32>
    %cst_178 = arith.constant 1.000000e+00 : f32
    %cst_179 = arith.constant 0.000000e+00 : f32
    %402 = vector.broadcast %cst_178 : f32 to vector<8x128xf32>
    %403 = vector.broadcast %cst_179 : f32 to vector<8x128xf32>
    %404 = arith.select %397, %402, %403 : vector<8x128xi1>, vector<8x128xf32>
    %cst_180 = arith.constant dense<0.000000e+00> : vector<128xf32>
    %405 = vector.multi_reduction <add>, %401, %cst_180 [0] : vector<8x128xf32> to vector<128xf32>
    %406 = vector.shape_cast %405 : vector<128xf32> to vector<1x128xf32>
    %cst_181 = arith.constant dense<0.000000e+00> : vector<128xf32>
    %407 = vector.multi_reduction <add>, %404, %cst_181 [0] : vector<8x128xf32> to vector<128xf32>
    %408 = vector.shape_cast %407 : vector<128xf32> to vector<1x128xf32>
    %409 = arith.mulf %406, %392 : vector<1x128xf32>
    %410 = arith.addf %343, %409 : vector<1x128xf32>
    %411 = arith.mulf %408, %392 : vector<1x128xf32>
    %412 = arith.addf %345, %411 : vector<1x128xf32>
    %c1_i32_182 = arith.constant 1 : i32
    %c6_i32 = arith.constant 6 : i32
    %413 = arith.addi %0, %c6_i32 : i32
    %414 = arith.index_cast %413 : i32 to index
    %415 = memref.load %arg1[%414] : memref<8xi32, #tpu.memory_space<smem>>
    %416 = vector.broadcast %415 : i32 to vector<8x1xi32>
    %417 = arith.cmpi ne, %1, %416 : vector<8x1xi32>
    %c8_i32_183 = arith.constant 8 : i32
    %418 = arith.cmpi slt, %413, %c8_i32_183 : i32
    %419 = vector.broadcast %418 : i1 to vector<8x1xi1>
    %420 = arith.andi %417, %419 : vector<8x1xi1>
    %c6_i32_184 = arith.constant 6 : i32
    %421 = vector.broadcast %c6_i32_184 : i32 to vector<8x8xi32>
    %422 = arith.cmpi eq, %6, %421 : vector<8x8xi32>
    %c0_185 = arith.constant 0 : index
    %c0_186 = arith.constant 0 : index
    %c0_187 = arith.constant 0 : index
    %423 = vector.load %arg4[%c0_185, %c0_186, %c0_187] : memref<1x8x8xf32, #tpu.memory_space<vmem>>, vector<1x8x8xf32>
    %424 = vector.shape_cast %423 : vector<1x8x8xf32> to vector<8x8xf32>
    %cst_188 = arith.constant 0.000000e+00 : f32
    %425 = vector.broadcast %cst_188 : f32 to vector<8x8xf32>
    %426 = arith.select %422, %424, %425 : vector<8x8xi1>, vector<8x8xf32>
    %cst_189 = arith.constant dense<0.000000e+00> : vector<8xf32>
    %427 = vector.multi_reduction <add>, %426, %cst_189 [1] : vector<8x8xf32> to vector<8xf32>
    %428 = vector.shape_cast %427 : vector<8xf32> to vector<8x1xf32>
    %cst_190 = arith.constant 1.000000e+30 : f32
    %429 = vector.broadcast %cst_190 : f32 to vector<8x1xf32>
    %430 = arith.select %420, %428, %429 : vector<8x1xi1>, vector<8x1xf32>
    %c0_191 = arith.constant 0 : index
    %c0_192 = arith.constant 0 : index
    %431 = vector.load %arg2[%c0_191, %c0_192] : memref<8x8xf32, #tpu.memory_space<vmem>>, vector<8x8xf32>
    %c0_193 = arith.constant 0 : index
    %c0_194 = arith.constant 0 : index
    %432 = vector.load %arg3[%c0_193, %c0_194] : memref<8x8xf32, #tpu.memory_space<vmem>>, vector<8x8xf32>
    %433 = vector.broadcast %430 : vector<8x1xf32> to vector<8x8xf32>
    %434 = arith.subf %433, %431 : vector<8x8xf32>
    %435 = vector.broadcast %3 : vector<1x1xf32> to vector<8x8xf32>
    %436 = arith.cmpf olt, %434, %435 : vector<8x8xf32>
    %cst_195 = arith.constant 0.000000e+00 : f32
    %437 = vector.broadcast %cst_195 : f32 to vector<8x8xf32>
    %438 = arith.maximumf %434, %437 : vector<8x8xf32>
    %439 = arith.mulf %432, %438 : vector<8x8xf32>
    %cst_196 = arith.constant 0.000000e+00 : f32
    %440 = vector.broadcast %cst_196 : f32 to vector<8x8xf32>
    %441 = arith.select %436, %439, %440 : vector<8x8xi1>, vector<8x8xf32>
    %cst_197 = arith.constant dense<0.000000e+00> : vector<8xf32>
    %442 = vector.multi_reduction <add>, %441, %cst_197 [0] : vector<8x8xf32> to vector<8xf32>
    %443 = vector.shape_cast %442 : vector<8xf32> to vector<1x8xf32>
    %444 = arith.addf %377, %443 : vector<1x8xf32>
    %cst_198 = arith.constant 0.000000e+00 : f32
    %445 = vector.broadcast %cst_198 : f32 to vector<8x8xf32>
    %446 = arith.select %436, %432, %445 : vector<8x8xi1>, vector<8x8xf32>
    %cst_199 = arith.constant dense<0.000000e+00> : vector<8xf32>
    %447 = vector.multi_reduction <add>, %446, %cst_199 [0] : vector<8x8xf32> to vector<8xf32>
    %448 = vector.shape_cast %447 : vector<8xf32> to vector<1x8xf32>
    %449 = arith.addf %382, %448 : vector<1x8xf32>
    %450 = vector.broadcast %415 : i32 to vector<1x128xi32>
    %451 = arith.cmpi ne, %2, %450 : vector<1x128xi32>
    %cst_200 = arith.constant 1.000000e+00 : f32
    %cst_201 = arith.constant 0.000000e+00 : f32
    %452 = vector.broadcast %cst_200 : f32 to vector<1x128xf32>
    %453 = vector.broadcast %cst_201 : f32 to vector<1x128xf32>
    %454 = arith.select %451, %452, %453 : vector<1x128xi1>, vector<1x128xf32>
    %c0_i32_202 = arith.constant 0 : i32
    %455 = arith.index_cast %c0_i32_202 : i32 to index
    %c0_203 = arith.constant 0 : index
    %456 = vector.load %arg5[%455, %c0_203] : memref<1x128xf32, #tpu.memory_space<vmem>>, vector<1x128xf32>
    %457 = arith.index_cast %c0_i32_202 : i32 to index
    %c0_204 = arith.constant 0 : index
    %458 = vector.load %arg6[%457, %c0_204] : memref<1x128xf32, #tpu.memory_space<vmem>>, vector<1x128xf32>
    %459 = arith.mulf %458, %454 : vector<1x128xf32>
    %460 = vector.broadcast %430 : vector<8x1xf32> to vector<8x128xf32>
    %461 = vector.broadcast %456 : vector<1x128xf32> to vector<8x128xf32>
    %462 = arith.subf %460, %461 : vector<8x128xf32>
    %463 = vector.broadcast %5 : vector<1x1xf32> to vector<8x128xf32>
    %464 = arith.cmpf olt, %462, %463 : vector<8x128xf32>
    %cst_205 = arith.constant 0.000000e+00 : f32
    %465 = vector.broadcast %cst_205 : f32 to vector<8x128xf32>
    %466 = arith.maximumf %462, %465 : vector<8x128xf32>
    %cst_206 = arith.constant 0.000000e+00 : f32
    %467 = vector.broadcast %cst_206 : f32 to vector<8x128xf32>
    %468 = arith.select %464, %466, %467 : vector<8x128xi1>, vector<8x128xf32>
    %cst_207 = arith.constant 1.000000e+00 : f32
    %cst_208 = arith.constant 0.000000e+00 : f32
    %469 = vector.broadcast %cst_207 : f32 to vector<8x128xf32>
    %470 = vector.broadcast %cst_208 : f32 to vector<8x128xf32>
    %471 = arith.select %464, %469, %470 : vector<8x128xi1>, vector<8x128xf32>
    %cst_209 = arith.constant dense<0.000000e+00> : vector<128xf32>
    %472 = vector.multi_reduction <add>, %468, %cst_209 [0] : vector<8x128xf32> to vector<128xf32>
    %473 = vector.shape_cast %472 : vector<128xf32> to vector<1x128xf32>
    %cst_210 = arith.constant dense<0.000000e+00> : vector<128xf32>
    %474 = vector.multi_reduction <add>, %471, %cst_210 [0] : vector<8x128xf32> to vector<128xf32>
    %475 = vector.shape_cast %474 : vector<128xf32> to vector<1x128xf32>
    %476 = arith.mulf %473, %459 : vector<1x128xf32>
    %477 = arith.addf %410, %476 : vector<1x128xf32>
    %478 = arith.mulf %475, %459 : vector<1x128xf32>
    %479 = arith.addf %412, %478 : vector<1x128xf32>
    %c1_i32_211 = arith.constant 1 : i32
    %c7_i32 = arith.constant 7 : i32
    %480 = arith.addi %0, %c7_i32 : i32
    %481 = arith.index_cast %480 : i32 to index
    %482 = memref.load %arg1[%481] : memref<8xi32, #tpu.memory_space<smem>>
    %483 = vector.broadcast %482 : i32 to vector<8x1xi32>
    %484 = arith.cmpi ne, %1, %483 : vector<8x1xi32>
    %c8_i32_212 = arith.constant 8 : i32
    %485 = arith.cmpi slt, %480, %c8_i32_212 : i32
    %486 = vector.broadcast %485 : i1 to vector<8x1xi1>
    %487 = arith.andi %484, %486 : vector<8x1xi1>
    %c7_i32_213 = arith.constant 7 : i32
    %488 = vector.broadcast %c7_i32_213 : i32 to vector<8x8xi32>
    %489 = arith.cmpi eq, %6, %488 : vector<8x8xi32>
    %c0_214 = arith.constant 0 : index
    %c0_215 = arith.constant 0 : index
    %c0_216 = arith.constant 0 : index
    %490 = vector.load %arg4[%c0_214, %c0_215, %c0_216] : memref<1x8x8xf32, #tpu.memory_space<vmem>>, vector<1x8x8xf32>
    %491 = vector.shape_cast %490 : vector<1x8x8xf32> to vector<8x8xf32>
    %cst_217 = arith.constant 0.000000e+00 : f32
    %492 = vector.broadcast %cst_217 : f32 to vector<8x8xf32>
    %493 = arith.select %489, %491, %492 : vector<8x8xi1>, vector<8x8xf32>
    %cst_218 = arith.constant dense<0.000000e+00> : vector<8xf32>
    %494 = vector.multi_reduction <add>, %493, %cst_218 [1] : vector<8x8xf32> to vector<8xf32>
    %495 = vector.shape_cast %494 : vector<8xf32> to vector<8x1xf32>
    %cst_219 = arith.constant 1.000000e+30 : f32
    %496 = vector.broadcast %cst_219 : f32 to vector<8x1xf32>
    %497 = arith.select %487, %495, %496 : vector<8x1xi1>, vector<8x1xf32>
    %c0_220 = arith.constant 0 : index
    %c0_221 = arith.constant 0 : index
    %498 = vector.load %arg2[%c0_220, %c0_221] : memref<8x8xf32, #tpu.memory_space<vmem>>, vector<8x8xf32>
    %c0_222 = arith.constant 0 : index
    %c0_223 = arith.constant 0 : index
    %499 = vector.load %arg3[%c0_222, %c0_223] : memref<8x8xf32, #tpu.memory_space<vmem>>, vector<8x8xf32>
    %500 = vector.broadcast %497 : vector<8x1xf32> to vector<8x8xf32>
    %501 = arith.subf %500, %498 : vector<8x8xf32>
    %502 = vector.broadcast %3 : vector<1x1xf32> to vector<8x8xf32>
    %503 = arith.cmpf olt, %501, %502 : vector<8x8xf32>
    %cst_224 = arith.constant 0.000000e+00 : f32
    %504 = vector.broadcast %cst_224 : f32 to vector<8x8xf32>
    %505 = arith.maximumf %501, %504 : vector<8x8xf32>
    %506 = arith.mulf %499, %505 : vector<8x8xf32>
    %cst_225 = arith.constant 0.000000e+00 : f32
    %507 = vector.broadcast %cst_225 : f32 to vector<8x8xf32>
    %508 = arith.select %503, %506, %507 : vector<8x8xi1>, vector<8x8xf32>
    %cst_226 = arith.constant dense<0.000000e+00> : vector<8xf32>
    %509 = vector.multi_reduction <add>, %508, %cst_226 [0] : vector<8x8xf32> to vector<8xf32>
    %510 = vector.shape_cast %509 : vector<8xf32> to vector<1x8xf32>
    %511 = arith.addf %444, %510 : vector<1x8xf32>
    %cst_227 = arith.constant 0.000000e+00 : f32
    %512 = vector.broadcast %cst_227 : f32 to vector<8x8xf32>
    %513 = arith.select %503, %499, %512 : vector<8x8xi1>, vector<8x8xf32>
    %cst_228 = arith.constant dense<0.000000e+00> : vector<8xf32>
    %514 = vector.multi_reduction <add>, %513, %cst_228 [0] : vector<8x8xf32> to vector<8xf32>
    %515 = vector.shape_cast %514 : vector<8xf32> to vector<1x8xf32>
    %516 = arith.addf %449, %515 : vector<1x8xf32>
    %517 = vector.broadcast %482 : i32 to vector<1x128xi32>
    %518 = arith.cmpi ne, %2, %517 : vector<1x128xi32>
    %cst_229 = arith.constant 1.000000e+00 : f32
    %cst_230 = arith.constant 0.000000e+00 : f32
    %519 = vector.broadcast %cst_229 : f32 to vector<1x128xf32>
    %520 = vector.broadcast %cst_230 : f32 to vector<1x128xf32>
    %521 = arith.select %518, %519, %520 : vector<1x128xi1>, vector<1x128xf32>
    %c0_i32_231 = arith.constant 0 : i32
    %522 = arith.index_cast %c0_i32_231 : i32 to index
    %c0_232 = arith.constant 0 : index
    %523 = vector.load %arg5[%522, %c0_232] : memref<1x128xf32, #tpu.memory_space<vmem>>, vector<1x128xf32>
    %524 = arith.index_cast %c0_i32_231 : i32 to index
    %c0_233 = arith.constant 0 : index
    %525 = vector.load %arg6[%524, %c0_233] : memref<1x128xf32, #tpu.memory_space<vmem>>, vector<1x128xf32>
    %526 = arith.mulf %525, %521 : vector<1x128xf32>
    %527 = vector.broadcast %497 : vector<8x1xf32> to vector<8x128xf32>
    %528 = vector.broadcast %523 : vector<1x128xf32> to vector<8x128xf32>
    %529 = arith.subf %527, %528 : vector<8x128xf32>
    %530 = vector.broadcast %5 : vector<1x1xf32> to vector<8x128xf32>
    %531 = arith.cmpf olt, %529, %530 : vector<8x128xf32>
    %cst_234 = arith.constant 0.000000e+00 : f32
    %532 = vector.broadcast %cst_234 : f32 to vector<8x128xf32>
    %533 = arith.maximumf %529, %532 : vector<8x128xf32>
    %cst_235 = arith.constant 0.000000e+00 : f32
    %534 = vector.broadcast %cst_235 : f32 to vector<8x128xf32>
    %535 = arith.select %531, %533, %534 : vector<8x128xi1>, vector<8x128xf32>
    %cst_236 = arith.constant 1.000000e+00 : f32
    %cst_237 = arith.constant 0.000000e+00 : f32
    %536 = vector.broadcast %cst_236 : f32 to vector<8x128xf32>
    %537 = vector.broadcast %cst_237 : f32 to vector<8x128xf32>
    %538 = arith.select %531, %536, %537 : vector<8x128xi1>, vector<8x128xf32>
    %cst_238 = arith.constant dense<0.000000e+00> : vector<128xf32>
    %539 = vector.multi_reduction <add>, %535, %cst_238 [0] : vector<8x128xf32> to vector<128xf32>
    %540 = vector.shape_cast %539 : vector<128xf32> to vector<1x128xf32>
    %cst_239 = arith.constant dense<0.000000e+00> : vector<128xf32>
    %541 = vector.multi_reduction <add>, %538, %cst_239 [0] : vector<8x128xf32> to vector<128xf32>
    %542 = vector.shape_cast %541 : vector<128xf32> to vector<1x128xf32>
    %543 = arith.mulf %540, %526 : vector<1x128xf32>
    %544 = arith.addf %477, %543 : vector<1x128xf32>
    %545 = arith.mulf %542, %526 : vector<1x128xf32>
    %546 = arith.addf %479, %545 : vector<1x128xf32>
    %c1_i32_240 = arith.constant 1 : i32
    %cst_241 = arith.constant dense<0.000000e+00> : vector<1xf32>
    %547 = vector.multi_reduction <add>, %511, %cst_241 [1] : vector<1x8xf32> to vector<1xf32>
    %548 = vector.shape_cast %547 : vector<1xf32> to vector<1x1xf32>
    %cst_242 = arith.constant dense<0.000000e+00> : vector<1xf32>
    %549 = vector.multi_reduction <add>, %516, %cst_242 [1] : vector<1x8xf32> to vector<1xf32>
    %550 = vector.shape_cast %549 : vector<1xf32> to vector<1x1xf32>
    %cst_243 = arith.constant dense<0.000000e+00> : vector<1xf32>
    %551 = vector.multi_reduction <add>, %544, %cst_243 [1] : vector<1x128xf32> to vector<1xf32>
    %552 = vector.shape_cast %551 : vector<1xf32> to vector<1x1xf32>
    %cst_244 = arith.constant dense<0.000000e+00> : vector<1xf32>
    %553 = vector.multi_reduction <add>, %546, %cst_244 [1] : vector<1x128xf32> to vector<1xf32>
    %554 = vector.shape_cast %553 : vector<1xf32> to vector<1x1xf32>
    %555 = tpu.iota {dimensions = array<i32: 1>} : vector<8x128xi32>
    %c0_i32_245 = arith.constant 0 : i32
    %556 = vector.broadcast %c0_i32_245 : i32 to vector<8x128xi32>
    %557 = arith.cmpi eq, %555, %556 : vector<8x128xi32>
    %cst_246 = arith.constant 0.000000e+00 : f32
    %558 = vector.shape_cast %548 : vector<1x1xf32> to vector<1x1xf32>
    %559 = vector.broadcast %558 : vector<1x1xf32> to vector<8x128xf32>
    %560 = vector.broadcast %cst_246 : f32 to vector<8x128xf32>
    %561 = arith.select %557, %559, %560 : vector<8x128xi1>, vector<8x128xf32>
    %c1_i32_247 = arith.constant 1 : i32
    %562 = vector.broadcast %c1_i32_247 : i32 to vector<8x128xi32>
    %563 = arith.cmpi eq, %555, %562 : vector<8x128xi32>
    %cst_248 = arith.constant 0.000000e+00 : f32
    %564 = vector.shape_cast %550 : vector<1x1xf32> to vector<1x1xf32>
    %565 = vector.broadcast %564 : vector<1x1xf32> to vector<8x128xf32>
    %566 = vector.broadcast %cst_248 : f32 to vector<8x128xf32>
    %567 = arith.select %563, %565, %566 : vector<8x128xi1>, vector<8x128xf32>
    %568 = arith.addf %561, %567 : vector<8x128xf32>
    %c2_i32_249 = arith.constant 2 : i32
    %569 = vector.broadcast %c2_i32_249 : i32 to vector<8x128xi32>
    %570 = arith.cmpi eq, %555, %569 : vector<8x128xi32>
    %cst_250 = arith.constant 0.000000e+00 : f32
    %571 = vector.shape_cast %552 : vector<1x1xf32> to vector<1x1xf32>
    %572 = vector.broadcast %571 : vector<1x1xf32> to vector<8x128xf32>
    %573 = vector.broadcast %cst_250 : f32 to vector<8x128xf32>
    %574 = arith.select %570, %572, %573 : vector<8x128xi1>, vector<8x128xf32>
    %575 = arith.addf %568, %574 : vector<8x128xf32>
    %c3_i32_251 = arith.constant 3 : i32
    %576 = vector.broadcast %c3_i32_251 : i32 to vector<8x128xi32>
    %577 = arith.cmpi eq, %555, %576 : vector<8x128xi32>
    %cst_252 = arith.constant 0.000000e+00 : f32
    %578 = vector.shape_cast %554 : vector<1x1xf32> to vector<1x1xf32>
    %579 = vector.broadcast %578 : vector<1x1xf32> to vector<8x128xf32>
    %580 = vector.broadcast %cst_252 : f32 to vector<8x128xf32>
    %581 = arith.select %577, %579, %580 : vector<8x128xi1>, vector<8x128xf32>
    %582 = arith.addf %575, %581 : vector<8x128xf32>
    %c0_253 = arith.constant 0 : index
    %c0_254 = arith.constant 0 : index
    %c0_255 = arith.constant 0 : index
    %583 = vector.load %arg10[%c0_253, %c0_254, %c0_255] : memref<1x8x128xf32, #tpu.memory_space<vmem>>, vector<1x8x128xf32>
    %584 = vector.shape_cast %583 : vector<1x8x128xf32> to vector<8x128xf32>
    %585 = vector.shape_cast %582 : vector<8x128xf32> to vector<1x8x128xf32>
    tpu.vector_store %arg10[%c0_253, %c0_254, %c0_255], %585 {strides = array<i32>} : memref<1x8x128xf32, #tpu.memory_space<vmem>>, vector<1x8x128xf32>,
    return
  }
  func.func @transform_0(%arg0: i32, %arg1: memref<8xi32, #tpu.memory_space<smem>>) -> (i32, i32) {
    %c0_i32 = arith.constant 0 : i32
    %c0_i32_0 = arith.constant 0 : i32
    %c0_i32_1 = arith.constant 0 : i32
    return %c0_i32, %c0_i32_0 : i32, i32
  }
  func.func @transform_1(%arg0: i32, %arg1: memref<8xi32, #tpu.memory_space<smem>>) -> (i32, i32) {
    %c0_i32 = arith.constant 0 : i32
    %c0_i32_0 = arith.constant 0 : i32
    %c0_i32_1 = arith.constant 0 : i32
    return %c0_i32, %c0_i32_0 : i32, i32
  }
  func.func @transform_2(%arg0: i32, %arg1: memref<8xi32, #tpu.memory_space<smem>>) -> (i32, i32, i32) {
    %c0_i32 = arith.constant 0 : i32
    %c0_i32_0 = arith.constant 0 : i32
    %c0_i32_1 = arith.constant 0 : i32
    return %arg0, %c0_i32, %c0_i32_0 : i32, i32, i32
  }
  func.func @transform_3(%arg0: i32, %arg1: memref<8xi32, #tpu.memory_space<smem>>) -> (i32, i32) {
    %c0_i32 = arith.constant 0 : i32
    %c0_i32_0 = arith.constant 0 : i32
    %c0_i32_1 = arith.constant 0 : i32
    return %c0_i32, %c0_i32_0 : i32, i32
  }
  func.func @transform_4(%arg0: i32, %arg1: memref<8xi32, #tpu.memory_space<smem>>) -> (i32, i32) {
    %c0_i32 = arith.constant 0 : i32
    %c0_i32_0 = arith.constant 0 : i32
    %c0_i32_1 = arith.constant 0 : i32
    return %c0_i32, %c0_i32_0 : i32, i32
  }
  func.func @transform_5(%arg0: i32, %arg1: memref<8xi32, #tpu.memory_space<smem>>) -> (i32, i32) {
    %c0_i32 = arith.constant 0 : i32
    %c0_i32_0 = arith.constant 0 : i32
    %c0_i32_1 = arith.constant 0 : i32
    return %c0_i32, %c0_i32_0 : i32, i32
  }
  func.func @transform_6(%arg0: i32, %arg1: memref<8xi32, #tpu.memory_space<smem>>) -> (i32, i32) {
    %c0_i32 = arith.constant 0 : i32
    %c0_i32_0 = arith.constant 0 : i32
    %c0_i32_1 = arith.constant 0 : i32
    return %c0_i32, %c0_i32_0 : i32, i32
  }
  func.func @transform_7(%arg0: i32, %arg1: memref<8xi32, #tpu.memory_space<smem>>) -> (i32, i32) {
    %c0_i32 = arith.constant 0 : i32
    %c0_i32_0 = arith.constant 0 : i32
    %c0_i32_1 = arith.constant 0 : i32
    return %c0_i32, %c0_i32_0 : i32, i32
  }
  func.func @transform_8(%arg0: i32, %arg1: memref<8xi32, #tpu.memory_space<smem>>) -> (i32, i32, i32) {
    %c0_i32 = arith.constant 0 : i32
    %c0_i32_0 = arith.constant 0 : i32
    %c0_i32_1 = arith.constant 0 : i32
    return %arg0, %c0_i32, %c0_i32_0 : i32, i32, i32
  }
}

</mosaic_0001>

<bundles_post_ra>
// kernel: tile.8
= control target key start
LH: loop header
LB: loop body
LE: loop exit
PB: predicated region body
PF: predicated region fallthrough
CT: control target
= control target key end

     0   :  { %s28_s0 = inlined_call_operand.vmem [shape: s32[8], index: 0, kind: input, shape index: {}]   ;;  %s29_s1 = inlined_call_operand.vmem [shape: s32[16,8], index: 1, kind: output, shape index: {}]  }
   0x1   :  { %v4_v0 = vld [vmem:[%s28_s0] ss:$0 sm:$0xff] }
   0x2   :  { %5 = vst [vmem:[%s29_s1] sm:$0xff] %v4_v0 }
   0x3   :  { %8 = vst [vmem:[%s29_s1 + $0x8] sm:$0xff] %v4_v0 }

// kernel: tile.9
= control target key start
LH: loop header
LB: loop body
LE: loop exit
PB: predicated region body
PF: predicated region fallthrough
CT: control target
= control target key end

     0   :  { %s131_s10 = smov 120   ;;  %s132_s11 = smov 104   ;;  %vm3_vm0 = vcmask 64512   ;;  %vm9_vm1 = vcmask 1048512   ;;  %vm15_vm2 = vcmask 982912   ;;  %vm21_vm3 = vcmask 917312   ;;  %s207_s0 = inlined_call_operand.vmem [shape: s32[16,8], index: 0, kind: input, shape index: {}]   ;;  %s208_s1 = inlined_call_operand.vmem [shape: s32[1,128], index: 1, kind: output, shape index: {}]  }
   0x1   :  { %v101_v0 = vld [vmem:[%s207_s0 + $0xf] sm:$0x1]   ;;  %v103_v1 = vld [vmem:[%s207_s0 + $0xd] sm:$0x1]   ;;  %v105_v2 = vld [vmem:[%s207_s0 + $0xb] sm:$0x1]  }
   0x2   :  { %7 = vrot.lane.b32.xlu0 %v101_v0, %s131_s10  ;;  %19 = vrot.lane.b32.xlu1 %v103_v1, %s132_s11  ;;  %s133_s14 = smov 88   ;;  %v102_v3 = vld [vmem:[%s207_s0 + $0xe] sm:$0x1]   ;;  %v104_v4 = vld [vmem:[%s207_s0 + $0xc] sm:$0x1]   ;;  %s134_s19 = smov 112  }
   0x3   :  { %31 = vrot.lane.b32.xlu2 %v105_v2, %s133_s14  ;;  %s135_s20 = smov 96   ;;  %v106_v5 = vld [vmem:[%s207_s0 + $0xa] sm:$0x1]   ;;  %s136_s23 = smov 80   ;;  %v107_v6 = vld [vmem:[%s207_s0 + $0x9] sm:$0x1]  }
   0x4   :  { %v108_v7 = vld [vmem:[%s207_s0 + $0x8] sm:$0x1]   ;;  %s137_s28 = smov 72   ;;  %s138_s29 = smov 64   ;;  %v109_v8 = vld [vmem:[%s207_s0 + $0x7] sm:$0x1]  }
   0x5   :  { %s139_s3 = smov 56   ;;  %v110_v9 = vld [vmem:[%s207_s0 + $0x6] sm:$0x1]   ;;  %v111_v10 = vld [vmem:[%s207_s0 + $0x5] sm:$0x1]   ;;  %s140_s8 = smov 48  }
   0x6   :  { %s141_s9 = smov 40   ;;  %v112_v11 = vld [vmem:[%s207_s0 + $0x4] sm:$0x1]   ;;  %s142_s12 = smov 32   ;;  %v113_v12 = vld [vmem:[%s207_s0 + $0x3] sm:$0x1]  }
   0x7   :  { %v114_v13 = vld [vmem:[%s207_s0 + $0x2] sm:$0x1]   ;;  %s143_s17 = smov 24   ;;  %s144_s18 = smov 16   ;;  %v115_v14 = vld [vmem:[%s207_s0 + $0x1] sm:$0x1]  }
   0x8   :  { %s145_s21 = smov 8   ;;  %v2_v15 = vld [vmem:[%s207_s0] sm:$0x1]   ;;  %vm27_vm4 = vcmask 851712   ;;  %vm33_vm5 = vcmask 786112   ;;  %vm39_vm6 = vcmask 720512  }
   0x9   :  { %4 = vst.msk [vmem:[#allocation0] sm:$0x1] %vm3_vm0, %v2_v15   ;;  %vm45_vm7 = vcmask 654912   ;;  %vm51_vm8 = vcmask 589312   ;;  %vm57_vm9 = vcmask 523712   ;;  %vm63_vm10 = vcmask 458112  }
   0xa   :  { %13 = vrot.lane.b32.xlu0 %v102_v3, %s134_s19  ;;  %25 = vrot.lane.b32.xlu1 %v104_v4, %s135_s20  ;;  %vm69_vm11 = vcmask 392512   ;;  %vm75_vm12 = vcmask 326912   ;;  %vm81_vm13 = vcmask 261312   ;;  %vm87_vm14 = vcmask 195712  }
   0xb   :  { %37 = vrot.lane.b32.xlu2 %v106_v5, %s136_s23  ;;  %vm93_vm15 = vcmask 130112  }
  0x12   :  { %43 = vrot.lane.b32.xlu0 %v107_v6, %s137_s28  ;;  %49 = vrot.lane.b32.xlu1 %v108_v7, %s138_s29 }
  0x13   :  { %55 = vrot.lane.b32.xlu2 %v109_v8, %s139_s3 }
  0x1a   :  { %61 = vrot.lane.b32.xlu0 %v110_v9, %s140_s8  ;;  %67 = vrot.lane.b32.xlu1 %v111_v10, %s141_s9 }
  0x1b   :  { %73 = vrot.lane.b32.xlu2 %v112_v11, %s142_s12 }
  0x22   :  { %79 = vrot.lane.b32.xlu0 %v113_v12, %s143_s17  ;;  %85 = vrot.lane.b32.xlu1 %v114_v13, %s144_s18 }
  0x23   :  { %91 = vrot.lane.b32.xlu2 %v115_v14, %s145_s21 }
  0x5d   :  { %v32_v16 = vpop.permute.xlu2 %31  }
  0x65   :  { %v38_v17 = vpop.permute.xlu2 %37  }
  0x6d   :  { %v56_v18 = vpop.permute.xlu2 %55  }
  0x74   :  { %v8_v19 = vpop.permute.xlu0 %7   ;;  %v20_v20 = vpop.permute.xlu1 %19  }
  0x75   :  { %10 = vst.msk [vmem:[#allocation0] sm:$0x1] %vm9_vm1, %v8_v19   ;;  %v74_v21 = vpop.permute.xlu2 %73  }
  0x7c   :  { %v14_v22 = vpop.permute.xlu0 %13   ;;  %v26_v23 = vpop.permute.xlu1 %25  }
  0x7d   :  { %16 = vst.msk [vmem:[#allocation0] sm:$0x1] %vm15_vm2, %v14_v22   ;;  %v92_v24 = vpop.permute.xlu2 %91  }
  0x7e   :  { %22 = vst.msk [vmem:[#allocation0] sm:$0x1] %vm21_vm3, %v20_v20  }
  0x7f   :  { %28 = vst.msk [vmem:[#allocation0] sm:$0x1] %vm27_vm4, %v26_v23  }
  0x80   :  { %34 = vst.msk [vmem:[#allocation0] sm:$0x1] %vm33_vm5, %v32_v16  }
  0x81   :  { %40 = vst.msk [vmem:[#allocation0] sm:$0x1] %vm39_vm6, %v38_v17  }
  0x84   :  { %v44_v25 = vpop.permute.xlu0 %43   ;;  %v50_v26 = vpop.permute.xlu1 %49  }
  0x85   :  { %46 = vst.msk [vmem:[#allocation0] sm:$0x1] %vm45_vm7, %v44_v25  }
  0x86   :  { %52 = vst.msk [vmem:[#allocation0] sm:$0x1] %vm51_vm8, %v50_v26  }
  0x87   :  { %58 = vst.msk [vmem:[#allocation0] sm:$0x1] %vm57_vm9, %v56_v18  }
  0x8c   :  { %v62_v27 = vpop.permute.xlu0 %61   ;;  %v68_v28 = vpop.permute.xlu1 %67  }
  0x8d   :  { %64 = vst.msk [vmem:[#allocation0] sm:$0x1] %vm63_vm10, %v62_v27  }
  0x8e   :  { %70 = vst.msk [vmem:[#allocation0] sm:$0x1] %vm69_vm11, %v68_v28  }
  0x8f   :  { %76 = vst.msk [vmem:[#allocation0] sm:$0x1] %vm75_vm12, %v74_v21  }
  0x94   :  { %v80_v29 = vpop.permute.xlu0 %79   ;;  %v86_v30 = vpop.permute.xlu1 %85  }
  0x95   :  { %82 = vst.msk [vmem:[#allocation0] sm:$0x1] %vm81_vm13, %v80_v29  }
  0x96   :  { %88 = vst.msk [vmem:[#allocation0] sm:$0x1] %vm87_vm14, %v86_v30  }
  0x97   :  { %94 = vst.msk [vmem:[#allocation0] sm:$0x1] %vm93_vm15, %v92_v24  }
  0x9e   :  { %v97_v31 = vld [vmem:[#allocation0] sm:$0x1] }
  0x9f   :  { %100 = vst [vmem:[%s208_s1] sm:$0x1] %v97_v31 }

// kernel: quadruplet_loss_pallas.2
= control target key start
LH: loop header
LB: loop body
LE: loop exit
PB: predicated region body
PF: predicated region fallthrough
CT: control target
= control target key end

     0   :  { %vm18_vm0 = vcmask 261120   ;;  %s299_s0 = inlined_call_operand.vmem [shape: f32[8,32], index: 0, kind: input, shape index: {}]   ;;  %s300_s1 = inlined_call_operand.vmem [shape: s32[8,1], index: 1, kind: input, shape index: {}]   ;;  %s301_s2 = inlined_call_operand.vmem [shape: s32[1,8], index: 2, kind: input, shape index: {}]   ;;  %s302_s3 = inlined_call_operand.vmem [shape: f32[8,8], index: 3, kind: output, shape index: {0}]   ;;  %s303_s4 = inlined_call_operand.hbm [shape: f32[1,1], index: 4, kind: output, shape index: {1}]  }
   0x1   :  { %v17_v0 = vld [vmem:[%s299_s0] sm:$0xff] }
   0x2   :  { %10 = vsyncpa [#allocation3], 0  ;;  %188 = vmatpush.xpose.msk.msra.mxu0 %vm18_vm0, %v17_v0  ;;  %v242_v1 = vmov 0   ;;  %v42_v2 = vlaneseq  ;;  %vm48_vm2 = vcmask 64512   ;;  %v76_v16 = vld [vmem:[%s300_s1] sm:$0xff]  ;;  %vm243_vm3 = vmmov 1  }
   0x3   :  { %208 = vset.pattern.permute.xlu0 %v242_v1  ;;  %v209_v23 = vld [vmem:[%s301_s2] ss:$0 sm:$0xff]  ;;  %v244_v30 = vmov 0.0   ;;  %v245_v32 = vmov 1.0   ;;  %s246_s27 = smov [#allocation2]   ;;  %s177_s5 = sshll.u32 %s303_s4, 4  ;;  %s178_s5 = int_to_ptr.hbm [resolvable:$true] %s177_s5 }
   0x4   :  { %v43_v3 = vshrl.u32 %v42_v2, 7  ;;  %v45_v4 = vand.u32 127, %v42_v2  ;;  %s175_s28 = sshll.u32 %s246_s27, 4  ;;  %s247_s7 = smov 0.0   ;;  %s176_s28 = int_to_ptr.vmem [resolvable:$true] %s175_s28 }
   0x5   :  { %189 = vmatmul.msk.f32.vlgmr.msra.gmra.mxu0 %vm18_vm0, %v17_v0 }
   0x6   :  { %vm46_vm1 = vcmp.eq.s32.totalorder %v43_v3, %v45_v4 }
   0x7   :  { %vm83_vm4 = vmxor %vm46_vm1, %vm243_vm3 }
  0x82   :  { %v39_v5 = vpop.f32.mrf.mxu0 }
  0x83   :  { %v47_v6 = vsel %vm46_vm1, %v39_v5, 0.0  ;;  %v58_v13 = vmul.f32 2.0, %v39_v5  ;;  %vm166_vm1 = vcmask 0  }
  0x84   :  { %v49_v7 = vsel %vm48_vm2, %v47_v6, 0.0 }
  0x85   :  { %v52_v8 = vrot.slane %v49_v7, 4  ;;  %50 = vadd.xlane.f32.xlu0 %v49_v7 }
  0x87   :  { %v53_v9 = vadd.f32 %v52_v8, %v49_v7 }
  0x89   :  { %v54_v10 = vrot.slane %v53_v9, 2 }
  0x8b   :  { %v55_v11 = vadd.f32 %v54_v10, %v53_v9 }
  0x8d   :  { %v56_v12 = vrot.slane %v55_v11, 1 }
  0x8f   :  { %v57_v14 = vadd.f32 %v56_v12, %v55_v11 }
  0x91   :  { %v59_v15 = vsub.f32 %v57_v14, %v58_v13 }
  0x99   :  { %79 = vperm.xlu0 %208, %v76_v16  }
  0xf8   :  { %v51_v17 = vpop.xlane.xlu0 %50 }
  0xf9   :  { %v60_v18 = vadd.f32 %v59_v15, %v51_v17 }
  0xfb   :  { %v61_v19 = vmax.f32 %v60_v18, 0.0 }
  0xfd   :  { %v62_v20 = vadd.f32 1e-16, %v61_v19 }
  0xff   :  { %210 = vrsqrt.f32 %v62_v20  ;;  %vm70_vm7 = vcmp.eq.f32.partialorder %v62_v20, inf  ;;  %v73_v34 = vand.u32 2147483648, %v62_v20  ;;  %vm72_vm8 = vcmp.eq.f32.partialorder %v62_v20, 0.0 }
 0x105   :  { %v211_v21 = vpop.eup %210 }
 0x106   :  { %v64_v22 = vmul.f32 %v211_v21, %v62_v20 }
 0x108   :  { %v65_v24 = vmul.f32 %v211_v21, %v64_v22 }
 0x10a   :  { %v66_v25 = vmul.f32 0.5, %v65_v24 }
 0x10b   :  { %v80_v26 = vpop.permute.xlu0 %79 }
 0x10c   :  { %vm82_vm5 = vcmp.eq.s32.totalorder %v80_v26, %v209_v23  ;;  %v67_v27 = vsub.f32 1.5, %v66_v25 }
 0x10d   :  { %vm84_vm6 = vmand %vm82_vm5, %vm83_vm4  ;;  %v86_v33 = vsel %vm82_vm5, 0.0, %v245_v32 }
 0x10e   :  { %v68_v28 = vmul.f32 %v211_v21, %v67_v27  ;;  %v85_v31 = vsel %vm84_vm6, 1.0, %v244_v30  ;;  %v136_v41 = vsel %vm48_vm2, %v86_v33, 0.0 }
 0x10f   :  { %v98_v42 = vsel %vm48_vm2, %v85_v31, 0.0 }
 0x110   :  { %v69_v29 = vmul.f32 %v68_v28, %v62_v20 }
 0x112   :  { %v71_v35 = vsel %vm70_vm7, %v62_v20, %v69_v29 }
 0x113   :  { %v74_v36 = vsel %vm72_vm8, %v73_v34, %v71_v35 }
 0x114   :  { %v125_v37 = vmul.f32 %v86_v33, %v74_v36  ;;  %75 = vst.msk [vmem:[%s302_s3] sm:$0xff] %vm48_vm2, %v74_v36  ;;  %v87_v38 = vmul.f32 %v85_v31, %v74_v36 }
 0x116   :  { %v126_v39 = vsel %vm48_vm2, %v125_v37, 0.0  ;;  %v88_v40 = vsel %vm48_vm2, %v87_v38, 0.0 }
 0x117   :  { %127 = vadd.xlane.f32.xlu2 %v126_v39  ;;  %89 = vadd.xlane.f32.xlu1 %v88_v40 }
 0x11f   :  { %137 = vadd.xlane.f32.xlu2 %v136_v41  ;;  %99 = vadd.xlane.f32.xlu1 %v98_v42 }
 0x18a   :  { %v90_v43 = vpop.xlane.xlu1 %89  ;;  %v128_v57 = vpop.xlane.xlu2 %127 }
 0x18b   :  { %v91_v44 = vrot.slane %v90_v43, 4  ;;  %v129_v59 = vrot.slane %v128_v57, 4 }
 0x18d   :  { %v92_v45 = vadd.f32 %v91_v44, %v90_v43  ;;  %v130_v62 = vadd.f32 %v129_v59, %v128_v57 }
 0x18f   :  { %v93_v46 = vrot.slane %v92_v45, 2  ;;  %v131_v0 = vrot.slane %v130_v62, 2 }
 0x191   :  { %v94_v47 = vadd.f32 %v93_v46, %v92_v45  ;;  %v132_v4 = vadd.f32 %v131_v0, %v130_v62 }
 0x192   :  { %v100_v48 = vpop.xlane.xlu1 %99  ;;  %v138_v58 = vpop.xlane.xlu2 %137 }
 0x193   :  { %v101_v49 = vrot.slane %v100_v48, 4  ;;  %v95_v50 = vrot.slane %v94_v47, 1  ;;  %v139_v60 = vrot.slane %v138_v58, 4  ;;  %v133_v10 = vrot.slane %v132_v4, 1 }
 0x195   :  { %v102_v51 = vadd.f32 %v101_v49, %v100_v48  ;;  %v96_v52 = vadd.f32 %v95_v50, %v94_v47  ;;  %v140_v63 = vadd.f32 %v139_v60, %v138_v58  ;;  %v134_v16 = vadd.f32 %v133_v10, %v132_v4 }
 0x197   :  { %v103_v53 = vrot.slane %v102_v51, 2  ;;  %190 = vpush %v96_v52  ;;  %v141_v1 = vrot.slane %v140_v63, 2 }
 0x199   :  { %v104_v54 = vadd.f32 %v103_v53, %v102_v51  ;;  %v142_v5 = vadd.f32 %v141_v1, %v140_v63 }
 0x19b   :  { %v105_v55 = vrot.slane %v104_v54, 1  ;;  %v143_v12 = vrot.slane %v142_v5, 1 }
 0x19d   :  { %v106_v56 = vadd.f32 %v105_v55, %v104_v54  ;;  %v144_v17 = vadd.f32 %v143_v12, %v142_v5 }
 0x19f   :  { %192 = vpush %v106_v56 }
 0x1c8   :  { %s293_s3 = spop %190 }
 0x1d0   :  { %s193_s20 = spop %192 }
 0x1d1   :  { %v108_v61 = vstv %s193_s20 }
 0x1d2   :  { %212 = vrcp.f32 %v108_v61  ;;  %v120_v7 = vand.u32 2147483648, %v108_v61  ;;  %v118_v9 = vand.u32 2147483647, %v108_v61  ;;  %vm114_vm10 = vweird.f32 %v108_v61 }
 0x1d4   :  { %v121_v13 = vor.u32 1.1754944e-38, %v120_v7  ;;  %vm119_vm12 = vcmp.eq.f32.partialorder %v118_v9, 8.507059e+37 }
 0x1d8   :  { %v213_v2 = vpop.eup %212 }
 0x1d9   :  { %v110_v3 = vmul.f32 %v213_v2, %v108_v61  ;;  %vm115_vm9 = vweird.f32 %v213_v2 }
 0x1da   :  { %vm116_vm11 = vmor %vm114_vm10, %vm115_vm9 }
 0x1db   :  { %v111_v6 = vsub.f32 1.0, %v110_v3 }
 0x1dd   :  { %v112_v8 = vmul.f32 %v213_v2, %v111_v6 }
 0x1df   :  { %v113_v11 = vadd.f32 %v213_v2, %v112_v8 }
 0x1e1   :  { %v117_v14 = vsel %vm116_vm11, %v213_v2, %v113_v11 }
 0x1e2   :  { %v122_v15 = vsel %vm119_vm12, %v121_v13, %v117_v14 }
 0x1e3   :  { %194 = vpush %v122_v15 }
 0x1e4   :  { %196 = vpush %v134_v16 }
 0x1e5   :  { %198 = vpush %v144_v17 }
 0x214   :  { %s195_s21 = spop %194 }
 0x215   :  { %s197_s22 = spop %196  ;;  %s124_s24 = smul.f32 %s195_s21, %s293_s3 }
 0x216   :  { %s199_s23 = spop %198 }
 0x217   :  { %v146_v18 = vstv %s199_s23 }
 0x218   :  { %214 = vrcp.f32 %v146_v18  ;;  %v158_v22 = vand.u32 2147483648, %v146_v18  ;;  %v156_v24 = vand.u32 2147483647, %v146_v18  ;;  %vm152_vm14 = vweird.f32 %v146_v18 }
 0x21a   :  { %v159_v26 = vor.u32 1.1754944e-38, %v158_v22  ;;  %vm157_vm0 = vcmp.eq.f32.partialorder %v156_v24, 8.507059e+37 }
 0x21e   :  { %v215_v19 = vpop.eup %214 }
 0x21f   :  { %v148_v20 = vmul.f32 %v215_v19, %v146_v18  ;;  %vm153_vm13 = vweird.f32 %v215_v19 }
 0x220   :  { %vm154_vm15 = vmor %vm152_vm14, %vm153_vm13 }
 0x221   :  { %v149_v21 = vsub.f32 1.0, %v148_v20 }
 0x223   :  { %v150_v23 = vmul.f32 %v215_v19, %v149_v21 }
 0x225   :  { %v151_v25 = vadd.f32 %v215_v19, %v150_v23 }
 0x227   :  { %v155_v27 = vsel %vm154_vm15, %v215_v19, %v151_v25 }
 0x228   :  { %v160_v28 = vsel %vm157_vm0, %v159_v26, %v155_v27 }
 0x229   :  { %200 = vpush %v160_v28 }
 0x25a   :  { %s201_s25 = spop %200 }
 0x25b   :  { %s162_s26 = smul.f32 %s201_s25, %s197_s22 }
 0x25d   :  { %s163_s6 = ssub.f32 %s162_s26, %s124_s24 }
 0x25f   :  { %s164_s8 = smax.f32 %s247_s7, %s163_s6 }
 0x260   :  { %v165_v29 = vstv %s164_s8 }
 0x261   :  { %167 = vst.msk [vmem:[#allocation2] sm:$0x1] %vm166_vm1, %v165_v29 }
 0x262   :  { %180 = dma.vmem_to_hbm [thread:$0]  %s176_s28, 16, %s178_s5, [#allocation3]  }
 0x263   :  { %240 = dma.done.wait [#allocation3], 16  }
 0x264   :  { %241 = vsyncadd [#allocation3], 4294967280 }
 0x265   :  { %187 = vsyncpa [#allocation3], 1 }

// kernel: quadruplet_loss_pallas.3
= control target key start
LH: loop header
LB: loop body
LE: loop exit
PB: predicated region body
PF: predicated region fallthrough
CT: control target
= control target key end

     0   :  { %s651_s14 = smov [#allocation3]   ;;  %s1039_s0 = inlined_call_operand.vmem [shape: s32[8], index: 0, kind: input, shape index: {}]   ;;  %s1040_s1 = inlined_call_operand.vmem [shape: f32[8,8], index: 1, kind: input, shape index: {}]   ;;  %s1041_s2 = inlined_call_operand.vmem [shape: f32[8,8], index: 2, kind: input, shape index: {}]   ;;  %s1042_s3 = inlined_call_operand.vmem [shape: f32[1,8,8], index: 3, kind: input, shape index: {}]   ;;  %s1043_s4 = inlined_call_operand.vmem [shape: f32[1,128], index: 4, kind: input, shape index: {}]   ;;  %s1044_s5 = inlined_call_operand.vmem [shape: f32[1,128], index: 5, kind: input, shape index: {}]   ;;  %s1045_s6 = inlined_call_operand.vmem [shape: s32[8,1], index: 6, kind: input, shape index: {}]   ;;  %s1046_s7 = inlined_call_operand.vmem [shape: s32[1,128], index: 7, kind: input, shape index: {}]   ;;  %s1047_s9 = inlined_call_operand.vmem [shape: f32[1,8,128], index: 9, kind: output, shape index: {}]   ;;  %s1048_s8 = inlined_call_operand.<no memory space> [shape: f32[1,1], index: 8, kind: input, shape index: {}]  }
   0x1   :  { %s15_s11 = sshll.u32 %s1039_s0, 4  ;;  %v19_v0 = vstv %s1048_s8  ;;  %s16_s11 = int_to_ptr.vmem [resolvable:$true] %s15_s11 }
   0x2   :  { %20 = vst [vmem:[#allocation4] sm:$0x1] %v19_v0  ;;  %18 = dma.vmem_to_smem %s16_s11, 16, %s651_s14, [#allocation2] }
   0x3   :  { %649 = dma.done.wait [#allocation2], 16 }
   0x4   :  { %650 = vsyncadd [#allocation2], 4294967280 }
   0x5   :  { %23 = sfence }
   0x6   :  { %v45_v1 = vlaneseq  ;;  %v652_v2 = vmov 0   ;;  %v56_v4 = vld [vmem:[%s1042_s3] sm:$0xff]  ;;  %vm58_vm0 = vcmask 64512   ;;  %s739_s0 = sld [smem:[#allocation3 + $0x1]]  ;;  %v653_v61 = vmov 0.0  }
   0x7   :  { %632 = vset.pattern.permute.xlu1 %v652_v2  ;;  %634 = vset.pattern.permute.xlu2 %v652_v2  ;;  %s741_s3 = sld [smem:[#allocation3]]  ;;  %v41_v25 = vld [vmem:[%s1045_s6] sm:$0xff] }
   0x8   :  { %v710_v3 = vand.u32 127, %v45_v1  ;;  %633 = vset.pattern.permute.xlu0 %v652_v2  ;;  %s743_s8 = sld [smem:[#allocation3 + $0x2]]  ;;  %v42_v51 = vld [vmem:[%s1046_s7] sm:$0x1] }
   0x9   :  { %v635_v21 = vld [vmem:[#allocation4] ss:$0 sm:$0xff]  ;;  %s749_s19 = sld [smem:[#allocation3 + $0x5]] }
   0xa   :  { %vm208_vm1 = vcmp.eq.s32.totalorder %v710_v3, 2  ;;  %vm142_vm2 = vcmp.eq.s32.totalorder %v710_v3, 1  ;;  %vm55_vm3 = vcmp.eq.s32.totalorder %v710_v3, 0  ;;  %vm406_vm4 = vcmp.eq.s32.totalorder %v710_v3, 5  ;;  %v43_v22 = vld [vmem:[#allocation4] sm:$0x1] }
   0xb   :  { %v209_v5 = vsel %vm208_vm1, %v56_v4, 0.0  ;;  %v143_v6 = vsel %vm142_vm2, %v56_v4, 0.0  ;;  %v57_v7 = vsel %vm55_vm3, %v56_v4, 0.0  ;;  %vm340_vm5 = vcmp.eq.s32.totalorder %v710_v3, 4  ;;  %s752_s20 = sld [smem:[#allocation3 + $0x4]]  ;;  %v779_v53 = vld [vmem:[%s1040_s1] sm:$0xff] }
   0xc   :  { %v210_v8 = vsel %vm58_vm0, %v209_v5, 0.0  ;;  %v144_v9 = vsel %vm58_vm0, %v143_v6, 0.0  ;;  %v59_v10 = vsel %vm58_vm0, %v57_v7, 0.0  ;;  %vm274_vm6 = vcmp.eq.s32.totalorder %v710_v3, 3  ;;  %s754_s21 = sld [smem:[#allocation3 + $0x3]]  ;;  %v786_v57 = vld [vmem:[%s1041_s2] sm:$0xff] }
   0xd   :  { %211 = vadd.xlane.f32.xlu1 %v210_v8  ;;  %145 = vadd.xlane.f32.xlu2 %v144_v9  ;;  %v407_v11 = vsel %vm406_vm4, %v56_v4, 0.0  ;;  %v275_v12 = vsel %vm274_vm6, %v56_v4, 0.0  ;;  %v341_v13 = vsel %vm340_vm5, %v56_v4, 0.0  ;;  %vm472_vm7 = vcmp.eq.s32.totalorder %v710_v3, 6  ;;  %s760_s6 = sld [smem:[#allocation3 + $0x6]] }
   0xe   :  { %60 = vadd.xlane.f32.xlu0 %v59_v10  ;;  %v408_v14 = vsel %vm58_vm0, %v407_v11, 0.0  ;;  %v276_v15 = vsel %vm58_vm0, %v275_v12, 0.0  ;;  %v342_v16 = vsel %vm58_vm0, %v341_v13, 0.0  ;;  %v473_v17 = vsel %vm472_vm7, %v56_v4, 0.0  ;;  %s762_s22 = sld [smem:[#allocation3 + $0x7]] }
   0xf   :  { %v474_v18 = vsel %vm58_vm0, %v473_v17, 0.0  ;;  %vm538_vm8 = vcmp.eq.s32.totalorder %v710_v3, 7  ;;  %v44_v23 = vmul.f32 0.5, %v43_v22  ;;  %v135_v26 = vstv %s739_s0  ;;  %v774_v52 = vld [vmem:[%s1043_s4] ss:$0 sm:$0xff] }
  0x10   :  { %v539_v19 = vsel %vm538_vm8, %v56_v4, 0.0  ;;  %v48_v27 = vstv %s741_s3  ;;  %vm136_vm9 = vcmp.ne.s32.totalorder %v41_v25, %v135_v26  ;;  %v201_v33 = vstv %s743_s8  ;;  %v101_v60 = vld [vmem:[%s1044_s5] sm:$0x1] }
  0x11   :  { %v540_v20 = vsel %vm58_vm0, %v539_v19, 0.0  ;;  %v108_v24 = vperm.slane %v44_v23, 0  ;;  %vm49_vm10 = vcmp.ne.s32.totalorder %v41_v25, %v48_v27  ;;  %v399_v34 = vstv %s749_s19 }
  0x12   :  { %v333_v35 = vstv %s752_s20  ;;  %vm202_vm11 = vcmp.ne.s32.totalorder %v41_v25, %v201_v33  ;;  %vm400_vm12 = vcmp.ne.s32.totalorder %v41_v25, %v399_v34  ;;  %v267_v40 = vstv %s754_s21 }
  0x13   :  { %vm334_vm13 = vcmp.ne.s32.totalorder %v41_v25, %v333_v35  ;;  %vm268_vm14 = vcmp.ne.s32.totalorder %v41_v25, %v267_v40  ;;  %v465_v45 = vstv %s760_s6  ;;  %vm241_vm5 = vcmp.ne.s32.totalorder %v42_v51, %v201_v33 }
  0x14   :  { %v531_v46 = vstv %s762_s22  ;;  %vm466_vm15 = vcmp.ne.s32.totalorder %v41_v25, %v465_v45  ;;  %vm175_vm7 = vcmp.ne.s32.totalorder %v42_v51, %v135_v26  ;;  %v242_v62 = vsel %vm241_vm5, 1.0, %v653_v61 }
  0x15   :  { %409 = vadd.xlane.f32.xlu1 %v408_v14  ;;  %277 = vadd.xlane.f32.xlu2 %v276_v15  ;;  %vm532_vm4 = vcmp.ne.s32.totalorder %v41_v25, %v531_v46  ;;  %v176_v0 = vsel %vm175_vm7, 1.0, %v653_v61  ;;  %v799_v4 = vmul.f32 %v242_v62, %v101_v60 }
  0x16   :  { %343 = vadd.xlane.f32.xlu0 %v342_v16  ;;  %v805_v8 = vmul.f32 %v176_v0, %v101_v60 }
  0x1d   :  { %475 = vadd.xlane.f32.xlu1 %v474_v18 }
  0x25   :  { %541 = vadd.xlane.f32.xlu1 %v540_v20 }
  0x3e   :  { %74 = vperm.xlu1 %632, %v635_v21  }
  0x46   :  { %110 = vperm.xlu1 %632, %v108_v24  }
  0x80   :  { %v212_v28 = vpop.xlane.xlu1 %211  ;;  %v146_v29 = vpop.xlane.xlu2 %145 }
  0x81   :  { %v147_v30 = vsel %vm136_vm9, %v146_v29, 1e+30  ;;  %v61_v31 = vpop.xlane.xlu0 %60  ;;  %v213_v37 = vsel %vm202_vm11, %v212_v28, 1e+30  ;;  %vm439_vm11 = vcmp.ne.s32.totalorder %v42_v51, %v399_v34 }
  0x82   :  { %v62_v32 = vsel %vm49_vm10, %v61_v31, 1e+30  ;;  %150 = vperm.xlu2 %634, %v147_v30   ;;  %vm98_vm10 = vcmp.ne.s32.totalorder %v42_v51, %v48_v27  ;;  %v440_v16 = vsel %vm439_vm11, 1.0, %v653_v61 }
  0x83   :  { %67 = vperm.xlu0 %633, %v62_v32   ;;  %v99_v9 = vsel %vm98_vm10, 1.0, %v653_v61  ;;  %v825_v31 = vmul.f32 %v440_v16, %v101_v60 }
  0x84   :  { %v823_v27 = vmul.f32 %v101_v60, %v99_v9 }
  0x88   :  { %v410_v36 = vpop.xlane.xlu1 %409  ;;  %v278_v42 = vpop.xlane.xlu2 %277 }
  0x89   :  { %v411_v38 = vsel %vm400_vm12, %v410_v36, 1e+30  ;;  %v344_v39 = vpop.xlane.xlu0 %343  ;;  %v279_v43 = vsel %vm268_vm14, %v278_v42, 1e+30  ;;  %vm373_vm12 = vcmp.ne.s32.totalorder %v42_v51, %v333_v35  ;;  %vm307_vm14 = vcmp.ne.s32.totalorder %v42_v51, %v267_v40 }
  0x8a   :  { %v345_v41 = vsel %vm334_vm13, %v344_v39, 1e+30  ;;  %216 = vperm.xlu2 %634, %v213_v37   ;;  %vm505_vm13 = vcmp.ne.s32.totalorder %v42_v51, %v465_v45  ;;  %v374_v17 = vsel %vm373_vm12, 1.0, %v653_v61  ;;  %v308_v20 = vsel %vm307_vm14, 1.0, %v653_v61 }
  0x8b   :  { %348 = vperm.xlu1 %632, %v345_v41   ;;  %414 = vperm.xlu0 %633, %v411_v38   ;;  %v506_v19 = vsel %vm505_vm13, 1.0, %v653_v61  ;;  %v827_v32 = vmul.f32 %v374_v17, %v101_v60  ;;  %v833_v35 = vmul.f32 %v308_v20, %v101_v60 }
  0x8c   :  { %v829_v33 = vmul.f32 %v506_v19, %v101_v60 }
  0x90   :  { %v476_v44 = vpop.xlane.xlu1 %475 }
  0x91   :  { %v477_v48 = vsel %vm466_vm15, %v476_v44, 1e+30  ;;  %vm571_vm15 = vcmp.ne.s32.totalorder %v42_v51, %v531_v46 }
  0x92   :  { %282 = vperm.xlu2 %634, %v279_v43   ;;  %v572_v23 = vsel %vm571_vm15, 1.0, %v653_v61 }
  0x93   :  { %v835_v36 = vmul.f32 %v572_v23, %v101_v60 }
  0x98   :  { %v542_v47 = vpop.xlane.xlu1 %541 }
  0x99   :  { %v543_v49 = vsel %vm532_vm4, %v542_v47, 1e+30 }
  0x9a   :  { %546 = vperm.xlu1 %632, %v543_v49   ;;  %480 = vperm.xlu2 %634, %v477_v48  }
  0xb0   :  { %v766_v50 = vpop.permute.xlu1 %74 }
  0xb8   :  { %v789_v59 = vpop.permute.xlu1 %110 }
  0xdc   :  { %v151_v54 = vpop.permute.xlu2 %150 }
  0xdd   :  { %v153_v55 = vsub.f32 %v151_v54, %v779_v53  ;;  %v178_v56 = vsub.f32 %v151_v54, %v774_v52 }
  0xdf   :  { %v155_v58 = vmax.f32 %v153_v55, 0.0  ;;  %vm154_vm8 = vcmp.lt.f32.partialorder %v153_v55, %v766_v50  ;;  %vm179_vm9 = vcmp.lt.f32.partialorder %v178_v56, %v789_v59  ;;  %v180_v2 = vmax.f32 %v178_v56, 0.0 }
  0xe0   :  { %v166_v63 = vsel %vm154_vm8, %v786_v57, 0.0  ;;  %v182_v5 = vsel %vm179_vm9, 1.0, %v653_v61 }
  0xe1   :  { %v156_v1 = vmul.f32 %v155_v58, %v786_v57  ;;  %v167_v7 = vsel %vm58_vm0, %v166_v63, 0.0  ;;  %v181_v12 = vsel %vm179_vm9, %v180_v2, 0.0  ;;  %v189_v13 = vrot.slane %v182_v5, 4 }
  0xe2   :  { %v168_v15 = vrot.slane %v167_v7, 4  ;;  %v183_v22 = vrot.slane %v181_v12, 4 }
  0xe3   :  { %v157_v6 = vsel %vm154_vm8, %v156_v1, 0.0  ;;  %v190_v30 = vadd.f32 %v189_v13, %v182_v5 }
  0xe4   :  { %v217_v10 = vpop.permute.xlu2 %216  ;;  %v158_v14 = vsel %vm58_vm0, %v157_v6, 0.0  ;;  %v169_v29 = vadd.f32 %v168_v15, %v167_v7  ;;  %v184_v39 = vadd.f32 %v183_v22, %v181_v12 }
  0xe5   :  { %v219_v11 = vsub.f32 %v217_v10, %v779_v53  ;;  %v159_v26 = vrot.slane %v158_v14, 4  ;;  %v244_v45 = vsub.f32 %v217_v10, %v774_v52  ;;  %v191_v47 = vrot.slane %v190_v30, 2 }
  0xe6   :  { %v170_v46 = vrot.slane %v169_v29, 2  ;;  %v185_v56 = vrot.slane %v184_v39, 2 }
  0xe7   :  { %vm220_vm4 = vcmp.lt.f32.partialorder %v219_v11, %v766_v50  ;;  %v221_v18 = vmax.f32 %v219_v11, 0.0  ;;  %v160_v43 = vadd.f32 %v159_v26, %v158_v14  ;;  %v246_v1 = vmax.f32 %v244_v45, 0.0 }
  0xe8   :  { %v232_v21 = vsel %vm220_vm4, %v786_v57, 0.0  ;;  %vm245_vm8 = vcmp.lt.f32.partialorder %v244_v45, %v789_v59  ;;  %v171_v14 = vadd.f32 %v170_v46, %v169_v29  ;;  %v192_v22 = vadd.f32 %v191_v47, %v190_v30 }
  0xe9   :  { %v222_v24 = vmul.f32 %v221_v18, %v786_v57  ;;  %v233_v25 = vsel %vm58_vm0, %v232_v21, 0.0  ;;  %v161_v63 = vrot.slane %v160_v43, 2  ;;  %v186_v18 = vadd.f32 %v185_v56, %v184_v39 }
  0xea   :  { %v234_v28 = vrot.slane %v233_v25, 4  ;;  %v858_v29 = vsel %vm245_vm8, %v246_v1, 0.0  ;;  %v172_v39 = vrot.slane %v171_v14, 1 }
  0xeb   :  { %v223_v34 = vsel %vm220_vm4, %v222_v24, 0.0  ;;  %v162_v17 = vadd.f32 %v161_v63, %v160_v43  ;;  %v187_v47 = vrot.slane %v186_v18, 1  ;;  %v249_v45 = vrot.slane %v858_v29, 4 }
  0xec   :  { %v224_v37 = vsel %vm58_vm0, %v223_v34, 0.0  ;;  %v283_v38 = vpop.permute.xlu2 %282  ;;  %v235_v44 = vadd.f32 %v234_v28, %v233_v25 }
  0xed   :  { %v225_v40 = vrot.slane %v224_v37, 4  ;;  %v285_v41 = vsub.f32 %v283_v38, %v779_v53  ;;  %v310_v42 = vsub.f32 %v283_v38, %v774_v52  ;;  %v863_v38 = vsel %vm245_vm8, 1.0, %v653_v61 }
  0xee   :  { %v236_v0 = vrot.slane %v235_v44, 2  ;;  %v163_v30 = vrot.slane %v162_v17, 1 }
  0xef   :  { %v226_v48 = vadd.f32 %v225_v40, %v224_v37  ;;  %vm286_vm5 = vcmp.lt.f32.partialorder %v285_v41, %v766_v50  ;;  %v287_v49 = vmax.f32 %v285_v41, 0.0  ;;  %vm311_vm7 = vcmp.lt.f32.partialorder %v310_v42, %v789_v59 }
  0xf0   :  { %v298_v51 = vsel %vm286_vm5, %v786_v57, 0.0  ;;  %v312_v54 = vmax.f32 %v310_v42, 0.0  ;;  %v314_v55 = vsel %vm311_vm7, 1.0, %v653_v61  ;;  %v237_v19 = vadd.f32 %v236_v0, %v235_v44 }
  0xf1   :  { %v288_v58 = vmul.f32 %v287_v49, %v786_v57  ;;  %v299_v60 = vsel %vm58_vm0, %v298_v51, 0.0  ;;  %v321_v62 = vrot.slane %v314_v55, 4  ;;  %v227_v6 = vrot.slane %v226_v48, 2 }
  0xf2   :  { %v300_v2 = vrot.slane %v299_v60, 4  ;;  %v313_v5 = vsel %vm311_vm7, %v312_v54, 0.0  ;;  %v238_v44 = vrot.slane %v237_v19, 1  ;;  %v879_v0 = vadd.f32 %v163_v30, %v162_v17 }
  0xf3   :  { %v289_v7 = vsel %vm286_vm5, %v288_v58, 0.0  ;;  %v315_v9 = vrot.slane %v313_v5, 4  ;;  %v322_v12 = vadd.f32 %v321_v62, %v314_v55  ;;  %v228_v23 = vadd.f32 %v227_v6, %v226_v48 }
  0xf4   :  { %v290_v10 = vsel %vm58_vm0, %v289_v7, 0.0  ;;  %v301_v11 = vadd.f32 %v300_v2, %v299_v60  ;;  %v481_v13 = vpop.permute.xlu2 %480  ;;  %v193_v48 = vrot.slane %v192_v22, 1  ;;  %v255_v55 = vrot.slane %v863_v38, 4 }
  0xf5   :  { %v291_v15 = vrot.slane %v290_v10, 4  ;;  %v316_v16 = vadd.f32 %v315_v9, %v313_v5  ;;  %v483_v21 = vsub.f32 %v481_v13, %v779_v53  ;;  %v508_v26 = vsub.f32 %v481_v13, %v774_v52  ;;  %v68_v1 = vpop.permute.xlu0 %67 }
  0xf6   :  { %v302_v20 = vrot.slane %v301_v11, 2  ;;  %v323_v34 = vrot.slane %v322_v12, 2  ;;  %v229_v49 = vrot.slane %v228_v23, 1  ;;  %v875_v58 = vadd.f32 %v172_v39, %v171_v14 }
  0xf7   :  { %v292_v24 = vadd.f32 %v291_v15, %v290_v10  ;;  %v317_v25 = vrot.slane %v316_v16, 2  ;;  %vm484_vm9 = vcmp.lt.f32.partialorder %v483_v21, %v766_v50  ;;  %v485_v37 = vmax.f32 %v483_v21, 0.0 }
  0xf8   :  { %v303_v28 = vadd.f32 %v302_v20, %v301_v11  ;;  %v496_v43 = vsel %vm484_vm9, %v786_v57, 0.0  ;;  %v510_v46 = vmax.f32 %v508_v26, 0.0  ;;  %v869_v54 = vadd.f32 %v323_v34, %v322_v12 }
  0xf9   :  { %v293_v40 = vrot.slane %v292_v24, 2  ;;  %v318_v41 = vadd.f32 %v317_v25, %v316_v16  ;;  %v486_v42 = vmul.f32 %v485_v37, %v786_v57  ;;  %vm509_vm10 = vcmp.lt.f32.partialorder %v508_v26, %v789_v59 }
  0xfa   :  { %v304_v51 = vrot.slane %v303_v28, 1  ;;  %v497_v56 = vsel %vm58_vm0, %v496_v43, 0.0  ;;  %v881_v2 = vadd.f32 %v238_v44, %v237_v19  ;;  %v511_v5 = vsel %vm509_vm10, %v510_v46, 0.0 }
  0xfb   :  { %v294_v60 = vadd.f32 %v293_v40, %v292_v24  ;;  %v319_v62 = vrot.slane %v318_v41, 1  ;;  %v487_v63 = vsel %vm484_vm9, %v486_v42, 0.0  ;;  %v885_v6 = vadd.f32 %v187_v47, %v186_v18 }
  0xfc   :  { %v887_v7 = vadd.f32 %v193_v48, %v192_v22  ;;  %v889_v10 = vadd.f32 %v229_v49, %v228_v23  ;;  %v891_v11 = vadd.f32 %v304_v51, %v303_v28  ;;  %v325_v12 = vrot.slane %v869_v54, 1 }
  0xfd   :  { %v349_v9 = vpop.permute.xlu1 %348  ;;  %v498_v13 = vrot.slane %v497_v56, 4  ;;  %v488_v14 = vsel %vm58_vm0, %v487_v63, 0.0  ;;  %v512_v15 = vsel %vm509_vm10, 1.0, %v653_v61  ;;  %v70_v16 = vsub.f32 %v68_v1, %v779_v53 }
  0xfe   :  { %v106_v17 = vsub.f32 %v68_v1, %v774_v52  ;;  %v295_v18 = vrot.slane %v294_v60, 1  ;;  %v320_v19 = vadd.f32 %v319_v62, %v318_v41  ;;  %v513_v20 = vrot.slane %v511_v5, 4 }
  0xff   :  { %v351_v21 = vsub.f32 %v349_v9, %v779_v53  ;;  %vm77_vm11 = vcmp.lt.f32.partialorder %v70_v16, %v766_v50  ;;  %v78_v22 = vmax.f32 %v70_v16, 0.0  ;;  %v489_v24 = vrot.slane %v488_v14, 4 }
 0x100   :  { %vm113_vm12 = vcmp.lt.f32.partialorder %v106_v17, %v789_v59  ;;  %v114_v23 = vmax.f32 %v106_v17, 0.0  ;;  %v519_v25 = vrot.slane %v512_v15, 4  ;;  %v89_v26 = vsel %vm77_vm11, %v786_v57, 0.0 }
 0x101   :  { %v116_v28 = vsel %vm113_vm12, 1.0, %v653_v61  ;;  %v79_v34 = vmul.f32 %v78_v22, %v786_v57  ;;  %v90_v37 = vsel %vm58_vm0, %v89_v26, 0.0  ;;  %v514_v40 = vadd.f32 %v513_v20, %v511_v5 }
 0x102   :  { %v115_v30 = vsel %vm113_vm12, %v114_v23, 0.0  ;;  %v123_v39 = vrot.slane %v116_v28, 4  ;;  %v91_v41 = vrot.slane %v90_v37, 4  ;;  %v376_v43 = vsub.f32 %v349_v9, %v774_v52 }
 0x103   :  { %v117_v42 = vrot.slane %v115_v30, 4  ;;  %v80_v44 = vsel %vm77_vm11, %v79_v34, 0.0  ;;  %vm352_vm13 = vcmp.lt.f32.partialorder %v351_v21, %v766_v50  ;;  %v353_v47 = vmax.f32 %v351_v21, 0.0 }
 0x104   :  { %v124_v46 = vadd.f32 %v123_v39, %v116_v28  ;;  %v81_v48 = vsel %vm58_vm0, %v80_v44, 0.0  ;;  %v92_v49 = vadd.f32 %v91_v41, %v90_v37  ;;  %v364_v62 = vsel %vm352_vm13, %v786_v57, 0.0 }
 0x105   :  { %v118_v51 = vadd.f32 %v117_v42, %v115_v30  ;;  %v82_v63 = vrot.slane %v81_v48, 4  ;;  %v354_v5 = vmul.f32 %v353_v47, %v786_v57  ;;  %v365_v9 = vsel %vm58_vm0, %v364_v62, 0.0  ;;  %v415_v62 = vpop.permute.xlu0 %414 }
 0x106   :  { %v125_v1 = vrot.slane %v124_v46, 2  ;;  %v93_v16 = vrot.slane %v92_v49, 2  ;;  %v366_v20 = vrot.slane %v365_v9, 4  ;;  %vm377_vm14 = vcmp.lt.f32.partialorder %v376_v43, %v789_v59 }
 0x107   :  { %v119_v17 = vrot.slane %v118_v51, 2  ;;  %v83_v22 = vadd.f32 %v82_v63, %v81_v48  ;;  %v355_v26 = vsel %vm352_vm13, %v354_v5, 0.0  ;;  %v378_v28 = vmax.f32 %v376_v43, 0.0 }
 0x108   :  { %v126_v23 = vadd.f32 %v125_v1, %v124_v46  ;;  %v922_v34 = vadd.f32 %v295_v18, %v294_v60  ;;  %v925_v37 = vmul.f32 %v320_v19, %v833_v35  ;;  %v927_v30 = vadd.f32 %v498_v13, %v497_v56 }
 0x109   :  { %v120_v39 = vadd.f32 %v119_v17, %v118_v51  ;;  %v515_v41 = vrot.slane %v514_v40, 2  ;;  %v94_v42 = vadd.f32 %v93_v16, %v92_v49  ;;  %v356_v47 = vsel %vm58_vm0, %v355_v26, 0.0 }
 0x10a   :  { %v127_v44 = vrot.slane %v126_v23, 1  ;;  %v930_v48 = vadd.f32 %v489_v24, %v488_v14  ;;  %v367_v21 = vadd.f32 %v366_v20, %v365_v9  ;;  %v379_v60 = vsel %vm377_vm14, %v378_v28, 0.0 }
 0x10b   :  { %v121_v46 = vrot.slane %v120_v39, 1  ;;  %v934_v18 = vadd.f32 %v519_v25, %v512_v15  ;;  %v195_v56 = vmul.f32 %v885_v6, %v805_v8  ;;  %v84_v13 = vrot.slane %v83_v22, 2 }
 0x10c   :  { %v128_v19 = vadd.f32 %v127_v44, %v126_v23  ;;  %v197_v49 = vmul.f32 %v887_v7, %v805_v8  ;;  %v357_v63 = vrot.slane %v356_v47, 4  ;;  %v417_v14 = vsub.f32 %v415_v62, %v779_v53  ;;  %v547_v28 = vpop.permute.xlu1 %546 }
 0x10d   :  { %v122_v51 = vadd.f32 %v121_v46, %v120_v39  ;;  %v941_v24 = vadd.f32 %v515_v41, %v514_v40  ;;  %v95_v1 = vrot.slane %v94_v42, 1  ;;  %v381_v9 = vrot.slane %v379_v60, 4 }
 0x10e   :  { %v131_v5 = vmul.f32 %v128_v19, %v823_v27  ;;  %v491_v15 = vrot.slane %v930_v48, 2  ;;  %v500_v25 = vrot.slane %v927_v30, 2  ;;  %v368_v16 = vrot.slane %v367_v21, 2 }
 0x10f   :  { %v129_v6 = vmul.f32 %v122_v51, %v823_v27  ;;  %v521_v17 = vrot.slane %v934_v18, 2  ;;  %v85_v8 = vadd.f32 %v84_v13, %v83_v22  ;;  %v380_v40 = vsel %vm377_vm14, 1.0, %v653_v61 }
 0x110   :  { %v948_v7 = vadd.f32 %v197_v49, %v131_v5  ;;  %v358_v23 = vadd.f32 %v357_v63, %v356_v47  ;;  %vm418_vm15 = vcmp.lt.f32.partialorder %v417_v14, %v766_v50  ;;  %v419_v26 = vmax.f32 %v417_v14, 0.0 }
 0x111   :  { %v953_v20 = vadd.f32 %v195_v56, %v129_v6  ;;  %v96_v27 = vadd.f32 %v95_v1, %v94_v42  ;;  %v382_v41 = vadd.f32 %v381_v9, %v379_v60  ;;  %v430_v22 = vsel %vm418_vm15, %v786_v57, 0.0 }
 0x112   :  { %v369_v44 = vadd.f32 %v368_v16, %v367_v21  ;;  %v420_v46 = vmul.f32 %v419_v26, %v786_v57  ;;  %v431_v43 = vsel %vm58_vm0, %v430_v22, 0.0  ;;  %v442_v56 = vsub.f32 %v415_v62, %v774_v52 }
 0x113   :  { %v86_v47 = vrot.slane %v85_v8, 1  ;;  %v387_v13 = vrot.slane %v380_v40, 4  ;;  %v432_v19 = vrot.slane %v431_v43, 4  ;;  %v549_v49 = vsub.f32 %v547_v28, %v779_v53 }
 0x114   :  { %v359_v51 = vrot.slane %v358_v23, 2  ;;  %v421_v42 = vsel %vm418_vm15, %v420_v46, 0.0  ;;  %vm443_vm4 = vcmp.lt.f32.partialorder %v442_v56, %v789_v59  ;;  %v444_v60 = vmax.f32 %v442_v56, 0.0 }
 0x115   :  { %v174_v21 = vadd.f32 %v875_v58, %v96_v27  ;;  %v383_v63 = vrot.slane %v382_v41, 2  ;;  %v422_v1 = vsel %vm58_vm0, %v421_v42, 0.0  ;;  %v433_v5 = vadd.f32 %v432_v19, %v431_v43 }
 0x116   :  { %v370_v9 = vrot.slane %v369_v44, 1  ;;  %v423_v62 = vrot.slane %v422_v1, 4  ;;  %v445_v6 = vsel %vm443_vm4, %v444_v60, 0.0  ;;  %v574_v53 = vsub.f32 %v547_v28, %v774_v52 }
 0x117   :  { %v434_v16 = vrot.slane %v433_v5, 2  ;;  %v447_v26 = vrot.slane %v445_v6, 4  ;;  %vm550_vm5 = vcmp.lt.f32.partialorder %v549_v49, %v766_v50  ;;  %v551_v14 = vmax.f32 %v549_v49, 0.0 }
 0x118   :  { %v87_v22 = vadd.f32 %v86_v47, %v85_v8  ;;  %v360_v46 = vadd.f32 %v359_v51, %v358_v23  ;;  %v388_v39 = vadd.f32 %v387_v13, %v380_v40  ;;  %v562_v58 = vsel %vm550_vm5, %v786_v57, 0.0 }
 0x119   :  { %v384_v27 = vadd.f32 %v383_v63, %v382_v41  ;;  %v446_v43 = vsel %vm443_vm4, 1.0, %v653_v61  ;;  %v552_v19 = vmul.f32 %v551_v14, %v786_v57  ;;  %v563_v52 = vsel %vm58_vm0, %v562_v58, 0.0 }
 0x11a   :  { %v448_v28 = vadd.f32 %v447_v26, %v445_v6  ;;  %v564_v42 = vrot.slane %v563_v52, 4  ;;  %vm575_vm7 = vcmp.lt.f32.partialorder %v574_v53, %v789_v59  ;;  %v576_v8 = vmax.f32 %v574_v53, 0.0 }
 0x11b   :  { %v424_v23 = vadd.f32 %v423_v62, %v422_v1  ;;  %v435_v40 = vadd.f32 %v434_v16, %v433_v5  ;;  %v553_v47 = vsel %vm550_vm5, %v552_v19, 0.0  ;;  %v240_v41 = vadd.f32 %v881_v2, %v174_v21 }
 0x11c   :  { %v165_v13 = vadd.f32 %v879_v0, %v87_v22  ;;  %v361_v56 = vrot.slane %v360_v46, 1  ;;  %v389_v51 = vrot.slane %v388_v39, 2  ;;  %v554_v57 = vsel %vm58_vm0, %v553_v47, 0.0 }
 0x11d   :  { %v453_v60 = vrot.slane %v446_v43, 4  ;;  %v565_v63 = vadd.f32 %v564_v42, %v563_v52  ;;  %v577_v6 = vsel %vm575_vm7, %v576_v8, 0.0  ;;  %v578_v26 = vsel %vm575_vm7, 1.0, %v653_v61 }
 0x11e   :  { %v449_v59 = vrot.slane %v448_v28, 2  ;;  %v579_v53 = vrot.slane %v577_v6, 4  ;;  %v306_v1 = vadd.f32 %v891_v11, %v240_v41  ;;  %v371_v5 = vadd.f32 %v370_v9, %v369_v44 }
 0x11f   :  { %v385_v50 = vrot.slane %v384_v27, 1  ;;  %v425_v49 = vrot.slane %v424_v23, 2  ;;  %v555_v62 = vrot.slane %v554_v57, 4  ;;  %v436_v2 = vrot.slane %v435_v40, 1 }
 0x120   :  { %v580_v21 = vadd.f32 %v579_v53, %v577_v6  ;;  %v585_v0 = vrot.slane %v578_v26, 4  ;;  %v372_v16 = vadd.f32 %v371_v5, %v306_v1  ;;  %v501_v14 = vadd.f32 %v500_v25, %v927_v30 }
 0x121   :  { %v390_v22 = vadd.f32 %v389_v51, %v388_v39  ;;  %v454_v58 = vadd.f32 %v453_v60, %v446_v43  ;;  %v437_v19 = vadd.f32 %v436_v2, %v435_v40  ;;  %v566_v61 = vrot.slane %v565_v63, 2 }
 0x122   :  { %v450_v52 = vadd.f32 %v449_v59, %v448_v28  ;;  %v581_v42 = vrot.slane %v580_v21, 2  ;;  %v502_v8 = vrot.slane %v501_v14, 1  ;;  %v250_v11 = vadd.f32 %v249_v45, %v858_v29 }
 0x123   :  { %v386_v44 = vadd.f32 %v385_v50, %v384_v27  ;;  %v426_v9 = vadd.f32 %v425_v49, %v424_v23  ;;  %v438_v47 = vadd.f32 %v437_v19, %v372_v16  ;;  %v567_v41 = vadd.f32 %v566_v61, %v565_v63 }
 0x124   :  { %v556_v6 = vadd.f32 %v555_v62, %v554_v57  ;;  %v586_v53 = vadd.f32 %v585_v0, %v578_v26  ;;  %v503_v1 = vadd.f32 %v502_v8, %v501_v14  ;;  %v251_v5 = vrot.slane %v250_v11, 2 }
 0x125   :  { %v455_v30 = vrot.slane %v454_v58, 2  ;;  %v568_v25 = vrot.slane %v567_v41, 1  ;;  %v231_v39 = vadd.f32 %v889_v10, %v165_v13  ;;  %v362_v43 = vadd.f32 %v361_v56, %v360_v46 }
 0x126   :  { %v451_v28 = vrot.slane %v450_v52, 1  ;;  %v582_v40 = vadd.f32 %v581_v42, %v580_v21  ;;  %v504_v51 = vadd.f32 %v503_v1, %v438_v47  ;;  %v252_v60 = vadd.f32 %v251_v5, %v250_v11 }
 0x127   :  { %v569_v59 = vadd.f32 %v568_v25, %v567_v41  ;;  %v297_v29 = vadd.f32 %v922_v34, %v231_v39  ;;  %v427_v45 = vrot.slane %v426_v9, 1  ;;  %v492_v27 = vadd.f32 %v491_v15, %v930_v48 }
 0x128   :  { %v587_v23 = vrot.slane %v586_v53, 2  ;;  %v253_v57 = vrot.slane %v252_v60, 1  ;;  %v557_v63 = vrot.slane %v556_v6, 2  ;;  %v256_v10 = vadd.f32 %v255_v55, %v863_v38 }
 0x129   :  { %v570_v46 = vadd.f32 %v569_v59, %v504_v51  ;;  %v363_v13 = vadd.f32 %v362_v43, %v297_v29  ;;  %v428_v56 = vadd.f32 %v427_v45, %v426_v9  ;;  %v493_v26 = vrot.slane %v492_v27, 1 }
 0x12a   :  { %v391_v50 = vrot.slane %v390_v22, 1  ;;  %v254_v49 = vadd.f32 %v253_v57, %v252_v60  ;;  %v558_v62 = vadd.f32 %v557_v63, %v556_v6  ;;  %v257_v34 = vrot.slane %v256_v10, 2 }
 0x12b   :  { %v456_v2 = vadd.f32 %v455_v30, %v454_v58  ;;  %v598_v21 = vsel %vm58_vm0, %v570_v46, 0.0  ;;  %v583_v0 = vrot.slane %v582_v40, 1  ;;  %v429_v48 = vadd.f32 %v428_v56, %v363_v13 }
 0x12c   :  { %599 = vadd.xlane.f32.xlu2 %v598_v21  ;;  %v261_v15 = vmul.f32 %v254_v49, %v799_v4  ;;  %v494_v16 = vadd.f32 %v493_v26, %v492_v27  ;;  %v559_v14 = vrot.slane %v558_v62, 1  ;;  %v258_v19 = vadd.f32 %v257_v34, %v256_v10 }
 0x12d   :  { %v522_v38 = vadd.f32 %v521_v17, %v934_v18  ;;  %v452_v55 = vadd.f32 %v451_v28, %v450_v52  ;;  %v588_v61 = vadd.f32 %v587_v23, %v586_v53  ;;  %v393_v42 = vmul.f32 %v386_v44, %v827_v32 }
 0x12e   :  { %v262_v58 = vadd.f32 %v261_v15, %v953_v20  ;;  %v495_v8 = vadd.f32 %v494_v16, %v429_v48  ;;  %v560_v11 = vadd.f32 %v559_v14, %v558_v62  ;;  %v259_v9 = vrot.slane %v258_v19, 1 }
 0x12f   :  { %v326_v47 = vadd.f32 %v325_v12, %v869_v54  ;;  %v392_v41 = vadd.f32 %v391_v50, %v390_v22  ;;  %v457_v6 = vrot.slane %v456_v2, 1  ;;  %v1049_v1 = vrot.slane %v941_v24, 1 }
 0x130   :  { %v328_v18 = vadd.f32 %v925_v37, %v262_v58  ;;  %v584_v17 = vadd.f32 %v583_v0, %v582_v40  ;;  %v561_v52 = vadd.f32 %v560_v11, %v495_v8  ;;  %v260_v44 = vadd.f32 %v259_v9, %v258_v19 }
 0x131   :  { %v518_v5 = vadd.f32 %v1049_v1, %v941_v24  ;;  %v523_v53 = vrot.slane %v522_v38, 1  ;;  %v459_v20 = vmul.f32 %v452_v55, %v825_v31  ;;  %v589_v54 = vrot.slane %v588_v61, 1 }
 0x132   :  { %v394_v30 = vadd.f32 %v393_v42, %v328_v18  ;;  %v595_v25 = vsel %vm58_vm0, %v561_v52, 0.0  ;;  %v263_v39 = vmul.f32 %v260_v44, %v799_v4  ;;  %v329_v12 = vmul.f32 %v326_v47, %v833_v35 }
 0x133   :  { %v458_v22 = vadd.f32 %v457_v6, %v456_v2  ;;  %v525_v43 = vmul.f32 %v518_v5, %v829_v33  ;;  %596 = vadd.xlane.f32.xlu0 %v595_v25  ;;  %v591_v37 = vmul.f32 %v584_v17, %v835_v36  ;;  %v395_v40 = vmul.f32 %v392_v41, %v827_v32 }
 0x134   :  { %v460_v24 = vadd.f32 %v459_v20, %v394_v30  ;;  %v264_v28 = vadd.f32 %v263_v39, %v948_v7  ;;  %v524_v59 = vadd.f32 %v523_v53, %v522_v38  ;;  %v590_v29 = vadd.f32 %v589_v54, %v588_v61 }
 0x135   :  { %vm601_vm0 = vcmask 1040384   ;;  %v461_v35 = vmul.f32 %v458_v22, %v825_v31 }
 0x136   :  { %v526_v51 = vadd.f32 %v525_v43, %v460_v24  ;;  %v330_v60 = vadd.f32 %v329_v12, %v264_v28  ;;  %v527_v57 = vmul.f32 %v524_v59, %v829_v33  ;;  %v593_v63 = vmul.f32 %v590_v29, %v835_v36 }
 0x138   :  { %v592_v4 = vadd.f32 %v591_v37, %v526_v51  ;;  %v396_v45 = vadd.f32 %v395_v40, %v330_v60 }
 0x13a   :  { %v602_v27 = vsel %vm601_vm0, %v592_v4, 0.0  ;;  %v462_v23 = vadd.f32 %v461_v35, %v396_v45 }
 0x13b   :  { %603 = vadd.xlane.f32.xlu1 %v602_v27 }
 0x13c   :  { %v528_v10 = vadd.f32 %v527_v57, %v462_v23 }
 0x13e   :  { %v594_v7 = vadd.f32 %v593_v63, %v528_v10 }
 0x140   :  { %v605_v46 = vsel %vm601_vm0, %v594_v7, 0.0 }
 0x141   :  { %606 = vadd.xlane.f32.xlu0 %v605_v46 }
 0x19f   :  { %v600_v13 = vpop.xlane.xlu2 %599 }
 0x1a0   :  { %v609_v31 = vsel %vm142_vm2, %v600_v13, 0.0 }
 0x1a6   :  { %v597_v32 = vpop.xlane.xlu0 %596 }
 0x1a7   :  { %v608_v50 = vsel %vm55_vm3, %v597_v32, 0.0 }
 0x1a8   :  { %v610_v49 = vadd.f32 %v609_v31, %v608_v50 }
 0x1ae   :  { %v604_v56 = vpop.xlane.xlu1 %603 }
 0x1af   :  { %v611_v26 = vperm.slane %v604_v56, 0 }
 0x1b1   :  { %v612_v33 = vsel %vm208_vm1, %v611_v26, 0.0 }
 0x1b2   :  { %v613_v34 = vadd.f32 %v612_v33, %v610_v49 }
 0x1b4   :  { %v607_v36 = vpop.xlane.xlu0 %606 }
 0x1b5   :  { %v614_v62 = vperm.slane %v607_v36, 0 }
 0x1b7   :  { %v615_v2 = vsel %vm274_vm6, %v614_v62, 0.0 }
 0x1b8   :  { %v616_v21 = vadd.f32 %v615_v2, %v613_v34 }
 0x1ba   :  { %617 = vst [vmem:[%s1047_s9] sm:$0xff] %v616_v21 }

</bundles_post_ra>
